<compile_context>
chip_gen: v6e
topology: v6e:2x2x1
jax: 0.10.0
libtpu: 0.0.40
codegen_flags: <defaults>
</compile_context>

<pallas_src>
import functools

import jax
import jax.numpy as jnp
import numpy as np
from jax.experimental import pallas as pl
from jax.experimental.pallas import tpu as pltpu

POS_BLOCK = 128     # lanes per conv-output position block (lane-dense epilogue)
OUT_PAD = 128       # lane-padded logit width for the final store


def _round_up(x, m):
    return ((x + m - 1) // m) * m


# ------------------------------- kernel ----------------------------------- #

def textcnn_kernel(emb_ref, wconv_ref, bconv_ref,
                   fc1w_ref, fc1b_ref, fc2w_ref, fc2b_ref, fc3w_ref, fc3b_ref,
                   out_ref, *, n_pos):
    """Processes TB batch rows per grid step.

    emb_ref   : (TB, L*D)        bf16  lane-dense embedded tokens
    wconv_ref : (L*D, n_pos*128) bf16  fused block-Toeplitz conv weight
    bconv_ref : (1, n_pos*128)   f32   per-(position, channel) conv bias
    fc*w      : (in, out) bf16 ;  fc*b : (1, out) f32
                (fc1 input / fc3 output padded to 128 lanes)
    out_ref   : (TB, 128) f32    lane-dense padded logits (cols 0..C-1 real)
    """
    emb = emb_ref[...]                                               # (TB, L*D) bf16

    # All three convs, all output positions: one MXU matmul, f32 accumulation.
    conv = jnp.dot(emb, wconv_ref[...], preferred_element_type=jnp.float32)
    conv = jnp.maximum(conv + bconv_ref[...], 0.0)                   # bias + ReLU (f32)

    # Max-pool over sequence positions: maximum over 128-aligned lane slices.
    pooled = conv[:, 0:POS_BLOCK]
    for t in range(1, n_pos):
        pooled = jnp.maximum(pooled, conv[:, t * POS_BLOCK:(t + 1) * POS_BLOCK])
    pooled = pooled.astype(jnp.bfloat16)                             # (TB, 128)

    h1 = jnp.maximum(
        jnp.dot(pooled, fc1w_ref[...], preferred_element_type=jnp.float32)
        + fc1b_ref[...], 0.0)                                        # fc1 + ReLU (+dropout=id)
    h1 = h1.astype(jnp.bfloat16)

    h2 = jnp.maximum(
        jnp.dot(h1, fc2w_ref[...], preferred_element_type=jnp.float32)
        + fc2b_ref[...], 0.0)                                        # fc2 + ReLU (+dropout=id)
    h2 = h2.astype(jnp.bfloat16)

    out_ref[...] = (jnp.dot(h2, fc3w_ref[...], preferred_element_type=jnp.float32)
                    + fc3b_ref[...])                                 # fc3 logits (lane-padded)


# ------------------------------- wrapper ---------------------------------- #

def _pick_tile_b(batch, row_bytes, weight_bytes, budget_bytes, max_tile=512):
    """Largest multiple-of-8 batch tile whose double-buffered stream fits the
    VMEM budget, forced to >=2 grid steps when the batch allows (two v7x TCs)."""
    b8 = _round_up(batch, 8)
    avail = max(budget_bytes - 2 * weight_bytes, 8 * row_bytes)
    tb = max(8, min(max_tile, (avail // row_bytes) // 8 * 8))
    tb = min(tb, b8)
    if b8 >= 16 and _round_up(b8, tb) // tb < 2:
        tb = _round_up(b8 // 2, 8)
    return tb


def textcnn_forward(tokens, params, *, tile_b=None, vmem_budget_bytes=24 << 20):
    """tokens: (B, L) int32.  Returns logits (B, num_classes) float32."""
    emb_table = params["embedding"]                      # (V, D) f32
    wconv, bconv = params["conv"]                        # (L*D, P*128) bf16, (1, P*128) f32
    fc1w, fc1b = params["fc1"]
    fc2w, fc2b = params["fc2"]
    fc3w, fc3b = params["fc3"]
    num_classes = params["num_classes"]

    B, L = tokens.shape
    D = emb_table.shape[1]
    assert wconv.shape[0] == L * D, "conv params were packed for a different max_len"
    n_pos = bconv.shape[1] // POS_BLOCK

    # Glue gather; bf16 halves the kernel's dominant input DMA; reshape to a
    # lane-dense (B, L*D) slab (L*D multiple of 128) so vld/DMA run unmasked.
    emb = jnp.take(emb_table, tokens, axis=0).astype(jnp.bfloat16).reshape(B, L * D)

    weight_bytes = sum(int(np.prod(a.shape)) * a.dtype.itemsize
                       for a in (wconv, bconv, fc1w, fc1b, fc2w, fc2b, fc3w, fc3b))
    row_bytes = 2 * (L * D * 2) + 2 * (OUT_PAD * 4)      # bf16 in + f32 out, double-buffered
    if tile_b is None:
        TB = _pick_tile_b(B, row_bytes, weight_bytes, vmem_budget_bytes)
    else:
        TB = min(_round_up(tile_b, 8), _round_up(B, 8))

    B_pad = _round_up(B, TB)
    if B_pad != B:
        emb = jnp.pad(emb, ((0, B_pad - B), (0, 0)))     # padded rows computed then dropped

    def replicated(arr):
        # Whole-array block, grid-invariant across the batch axis.
        nd = arr.ndim
        return pl.BlockSpec(arr.shape, lambda b, nd=nd: (0,) * nd)

    kernel = pl.pallas_call(
        functools.partial(textcnn_kernel, n_pos=n_pos),
        out_shape=jax.ShapeDtypeStruct((B_pad, OUT_PAD), jnp.float32),
        grid=(B_pad // TB,),
        in_specs=[
            pl.BlockSpec((TB, L * D), lambda b: (b, 0)),
            replicated(wconv), replicated(bconv),
            replicated(fc1w), replicated(fc1b),
            replicated(fc2w), replicated(fc2b),
            replicated(fc3w), replicated(fc3b),
        ],
        out_specs=pl.BlockSpec((TB, OUT_PAD), lambda b: (b, 0)),
        compiler_params=pltpu.CompilerParams(
            dimension_semantics=("parallel",),
            vmem_limit_bytes=32 * 1024 * 1024),
    )
    out = kernel(emb, wconv, bconv, fc1w, fc1b, fc2w, fc2b, fc3w, fc3b)
    return out[:B, :num_classes]


# ------------------------- parameter construction ------------------------- #

def make_params(key, vocab_size, embedding_dim, filters_num, filter_sizes,
                max_len, num_classes=2):
    keys = jax.random.split(key, 1 + 2 * len(filter_sizes) + 3)
    ki = iter(keys)

    D, F = embedding_dim, filters_num
    emb_table = 0.1 * jax.random.normal(next(ki), (vocab_size, D), jnp.float32)

    convs_pt = []
    for k in filter_sizes:
        w_pt = 0.1 * jax.random.normal(next(ki), (F, 1, k, D), jnp.float32)
        b_pt = 0.1 * jax.random.normal(next(ki), (F,), jnp.float32)
        convs_pt.append((w_pt, b_pt))

    # Fused block-Toeplitz conv weight: rows = flattened (L, D) embedding lanes,
    # cols = P position blocks of 128 lanes, each [conv_0 F | conv_1 F | ... | 0].
    P = max_len - min(filter_sizes) + 1
    wconv = np.zeros((max_len * D, P * POS_BLOCK), np.float32)
    bconv = np.zeros((1, P * POS_BLOCK), np.float32)
    for ci, (k, (w_pt, b_pt)) in enumerate(zip(filter_sizes, convs_pt)):
        w = np.asarray(w_pt)[:, 0]                       # (F, k, D)
        b = np.asarray(b_pt)
        for t in range(max_len - k + 1):                 # valid output positions only
            c0 = t * POS_BLOCK + ci * F
            for s in range(k):
                wconv[(t + s) * D:(t + s + 1) * D, c0:c0 + F] = w[:, s, :].T
            bconv[0, c0:c0 + F] = b
    # Padded position / channel columns keep zero weight AND zero bias, so they
    # produce exactly 0 post-ReLU and never beat the real (>=0) max-pool value.

    def linear(key, n_in, n_out):
        kw, kb = jax.random.split(key)
        w_pt = 0.1 * jax.random.normal(kw, (n_out, n_in), jnp.float32)   # PyTorch (out, in)
        b_pt = 0.1 * jax.random.normal(kb, (n_out,), jnp.float32)
        return (w_pt, b_pt)

    fc1_pt = linear(next(ki), F * len(filter_sizes), 512)
    fc2_pt = linear(next(ki), 512, 128)
    fc3_pt = linear(next(ki), 128, num_classes)

    # Kernel layouts: (in, out) bf16 weights, (1, out) f32 biases.
    fc1w = np.zeros((POS_BLOCK, 512), np.float32)        # fc1 input padded 3F -> 128 lanes
    fc1w[:F * len(filter_sizes), :] = np.asarray(fc1_pt[0]).T
    fc2w = np.asarray(fc2_pt[0]).T                       # (512, 128)
    fc3w = np.zeros((128, OUT_PAD), np.float32)          # fc3 output padded 2 -> 128 lanes
    fc3w[:, :num_classes] = np.asarray(fc3_pt[0]).T
    fc3b = np.zeros((1, OUT_PAD), np.float32)
    fc3b[0, :num_classes] = np.asarray(fc3_pt[1])

    params = {
        "embedding": emb_table,
        "conv": (jnp.asarray(wconv, jnp.bfloat16), jnp.asarray(bconv, jnp.float32)),
        "fc1": (jnp.asarray(fc1w, jnp.bfloat16),
                jnp.asarray(fc1_pt[1]).reshape(1, -1).astype(jnp.float32)),
        "fc2": (jnp.asarray(fc2w, jnp.bfloat16),
                jnp.asarray(fc2_pt[1]).reshape(1, -1).astype(jnp.float32)),
        "fc3": (jnp.asarray(fc3w, jnp.bfloat16), jnp.asarray(fc3b, jnp.float32)),
        "num_classes": num_classes,
    }
    params_pt = {"embedding": emb_table, "convs": convs_pt,
                 "fc1": fc1_pt, "fc2": fc2_pt, "fc3": fc3_pt}
    return params, params_pt


def ref_forward(tokens, params_pt):
    """Pure-JAX reference mirroring the PyTorch forward (eval mode, f32)."""
    emb = params_pt["embedding"][tokens].astype(jnp.float32)   # (B, L, D)
    B, L, D = emb.shape
    feats = []
    for w_pt, b_pt in params_pt["convs"]:                      # (F,1,k,D), (F,)
        k = w_pt.shape[2]
        l_out = L - k + 1
        cols = []
        for t in range(l_out):
            patch = emb[:, t:t + k, :]                          # (B, k, D)
            cols.append(jnp.einsum("bkd,fkd->bf", patch, w_pt[:, 0]) + b_pt)
        conv = jnp.stack(cols, axis=2)                          # (B, F, L_out)
        conv = jnp.maximum(conv, 0.0)
        feats.append(jnp.max(conv, axis=2))                     # (B, F)
    x = jnp.concatenate(feats, axis=1)
    (w1, b1), (w2, b2), (w3, b3) = params_pt["fc1"], params_pt["fc2"], params_pt["fc3"]
    x = jnp.maximum(x @ w1.T + b1, 0.0)
    x = jnp.maximum(x @ w2.T + b2, 0.0)
    return x @ w3.T + b3


if __name__ == "__main__":
    vocab_size = 50
    embedding_dim = 32
    filters_num = 8
    filter_sizes = (2, 3, 4)
    batch, max_len = 12, 16

    key = jax.random.PRNGKey(0)
    k_param, k_tok = jax.random.split(key)
    params, params_pt = make_params(k_param, vocab_size, embedding_dim,
                                    filters_num, filter_sizes, max_len)
    tokens = jax.random.randint(k_tok, (batch, max_len), 0, vocab_size, dtype=jnp.int32)

    # Auto tile -> TB=8 (batch 12 -> padded 16), 2 grid steps.
    out = textcnn_forward(tokens, params)
    out = jax.block_until_ready(out)

    ref = jax.block_until_ready(ref_forward(tokens, params_pt))
    # bf16 MXU operands (emb / conv / FC weights and activations) -> loosened
    # tolerance vs the f32 reference.
    np.testing.assert_allclose(np.asarray(out), np.asarray(ref), rtol=2e-2, atol=2e-2)

    print("KERNEL_OK")
</pallas_src>

<mosaic_0001>
module attributes {stable_mosaic.version = 11 : i64} {
  func.func @textcnn_kernel(%arg0: i32, %arg1: memref<8x512xbf16, #tpu.memory_space<vmem>>, %arg2: memref<512x1920xbf16, #tpu.memory_space<vmem>>, %arg3: memref<1x1920xf32, #tpu.memory_space<vmem>>, %arg4: memref<128x512xbf16, #tpu.memory_space<vmem>>, %arg5: memref<1x512xf32, #tpu.memory_space<vmem>>, %arg6: memref<512x128xbf16, #tpu.memory_space<vmem>>, %arg7: memref<1x128xf32, #tpu.memory_space<vmem>>, %arg8: memref<128x128xbf16, #tpu.memory_space<vmem>>, %arg9: memref<1x128xf32, #tpu.memory_space<vmem>>, %arg10: memref<8x128xf32, #tpu.memory_space<vmem>>) attributes {dimension_semantics = [#tpu.dimension_semantics<parallel>], iteration_bounds = array<i64: 2>, scalar_prefetch = 0 : i64, scratch_operands = 0 : i64, tpu.core_type = #tpu.core_type<tc>, window_params = [{transform_indices = @transform_0, window_bounds = array<i64: 8, 512>}, {pipeline_mode = #tpu.pipeline_mode<synchronous>, transform_indices = @transform_1, window_bounds = array<i64: 512, 1920>}, {pipeline_mode = #tpu.pipeline_mode<synchronous>, transform_indices = @transform_2, window_bounds = array<i64: 1, 1920>}, {pipeline_mode = #tpu.pipeline_mode<synchronous>, transform_indices = @transform_3, window_bounds = array<i64: 128, 512>}, {pipeline_mode = #tpu.pipeline_mode<synchronous>, transform_indices = @transform_4, window_bounds = array<i64: 1, 512>}, {pipeline_mode = #tpu.pipeline_mode<synchronous>, transform_indices = @transform_5, window_bounds = array<i64: 512, 128>}, {pipeline_mode = #tpu.pipeline_mode<synchronous>, transform_indices = @transform_6, window_bounds = array<i64: 1, 128>}, {pipeline_mode = #tpu.pipeline_mode<synchronous>, transform_indices = @transform_7, window_bounds = array<i64: 128, 128>}, {pipeline_mode = #tpu.pipeline_mode<synchronous>, transform_indices = @transform_8, window_bounds = array<i64: 1, 128>}, {transform_indices = @transform_9, window_bounds = array<i64: 8, 128>}]} {
    %c0 = arith.constant 0 : index
    %c0_0 = arith.constant 0 : index
    %0 = vector.load %arg1[%c0, %c0_0] : memref<8x512xbf16, #tpu.memory_space<vmem>>, vector<8x512xbf16>
    %c0_1 = arith.constant 0 : index
    %c0_2 = arith.constant 0 : index
    %1 = vector.load %arg2[%c0_1, %c0_2] : memref<512x1920xbf16, #tpu.memory_space<vmem>>, vector<512x1920xbf16>
    %cst = arith.constant dense<0.000000e+00> : vector<8x1920xf32>
    %2 = tpu.matmul %0, %1, %cst {dimension_numbers = #tpu.dot_dimension_numbers<[1], [0], [0], [1], [0, 0, 1, 1], [], []>} : vector<8x512xbf16>, vector<512x1920xbf16>, vector<8x1920xf32> -> vector<8x1920xf32>
    %c0_3 = arith.constant 0 : index
    %c0_4 = arith.constant 0 : index
    %3 = vector.load %arg3[%c0_3, %c0_4] : memref<1x1920xf32, #tpu.memory_space<vmem>>, vector<1x1920xf32>
    %4 = vector.broadcast %3 : vector<1x1920xf32> to vector<8x1920xf32>
    %5 = arith.addf %2, %4 : vector<8x1920xf32>
    %cst_5 = arith.constant 0.000000e+00 : f32
    %6 = vector.broadcast %cst_5 : f32 to vector<8x1920xf32>
    %7 = arith.maximumf %5, %6 : vector<8x1920xf32>
    %8 = vector.extract_strided_slice %7 {offsets = [0, 0], sizes = [8, 128], strides = [1, 1]} : vector<8x1920xf32> to vector<8x128xf32>
    %9 = vector.extract_strided_slice %7 {offsets = [0, 128], sizes = [8, 128], strides = [1, 1]} : vector<8x1920xf32> to vector<8x128xf32>
    %10 = arith.maximumf %8, %9 : vector<8x128xf32>
    %11 = vector.extract_strided_slice %7 {offsets = [0, 256], sizes = [8, 128], strides = [1, 1]} : vector<8x1920xf32> to vector<8x128xf32>
    %12 = arith.maximumf %10, %11 : vector<8x128xf32>
    %13 = vector.extract_strided_slice %7 {offsets = [0, 384], sizes = [8, 128], strides = [1, 1]} : vector<8x1920xf32> to vector<8x128xf32>
    %14 = arith.maximumf %12, %13 : vector<8x128xf32>
    %15 = vector.extract_strided_slice %7 {offsets = [0, 512], sizes = [8, 128], strides = [1, 1]} : vector<8x1920xf32> to vector<8x128xf32>
    %16 = arith.maximumf %14, %15 : vector<8x128xf32>
    %17 = vector.extract_strided_slice %7 {offsets = [0, 640], sizes = [8, 128], strides = [1, 1]} : vector<8x1920xf32> to vector<8x128xf32>
    %18 = arith.maximumf %16, %17 : vector<8x128xf32>
    %19 = vector.extract_strided_slice %7 {offsets = [0, 768], sizes = [8, 128], strides = [1, 1]} : vector<8x1920xf32> to vector<8x128xf32>
    %20 = arith.maximumf %18, %19 : vector<8x128xf32>
    %21 = vector.extract_strided_slice %7 {offsets = [0, 896], sizes = [8, 128], strides = [1, 1]} : vector<8x1920xf32> to vector<8x128xf32>
    %22 = arith.maximumf %20, %21 : vector<8x128xf32>
    %23 = vector.extract_strided_slice %7 {offsets = [0, 1024], sizes = [8, 128], strides = [1, 1]} : vector<8x1920xf32> to vector<8x128xf32>
    %24 = arith.maximumf %22, %23 : vector<8x128xf32>
    %25 = vector.extract_strided_slice %7 {offsets = [0, 1152], sizes = [8, 128], strides = [1, 1]} : vector<8x1920xf32> to vector<8x128xf32>
    %26 = arith.maximumf %24, %25 : vector<8x128xf32>
    %27 = vector.extract_strided_slice %7 {offsets = [0, 1280], sizes = [8, 128], strides = [1, 1]} : vector<8x1920xf32> to vector<8x128xf32>
    %28 = arith.maximumf %26, %27 : vector<8x128xf32>
    %29 = vector.extract_strided_slice %7 {offsets = [0, 1408], sizes = [8, 128], strides = [1, 1]} : vector<8x1920xf32> to vector<8x128xf32>
    %30 = arith.maximumf %28, %29 : vector<8x128xf32>
    %31 = vector.extract_strided_slice %7 {offsets = [0, 1536], sizes = [8, 128], strides = [1, 1]} : vector<8x1920xf32> to vector<8x128xf32>
    %32 = arith.maximumf %30, %31 : vector<8x128xf32>
    %33 = vector.extract_strided_slice %7 {offsets = [0, 1664], sizes = [8, 128], strides = [1, 1]} : vector<8x1920xf32> to vector<8x128xf32>
    %34 = arith.maximumf %32, %33 : vector<8x128xf32>
    %35 = vector.extract_strided_slice %7 {offsets = [0, 1792], sizes = [8, 128], strides = [1, 1]} : vector<8x1920xf32> to vector<8x128xf32>
    %36 = arith.maximumf %34, %35 : vector<8x128xf32>
    %37 = arith.truncf %36 : vector<8x128xf32> to vector<8x128xbf16>
    %c0_6 = arith.constant 0 : index
    %c0_7 = arith.constant 0 : index
    %38 = vector.load %arg4[%c0_6, %c0_7] : memref<128x512xbf16, #tpu.memory_space<vmem>>, vector<128x512xbf16>
    %cst_8 = arith.constant dense<0.000000e+00> : vector<8x512xf32>
    %39 = tpu.matmul %37, %38, %cst_8 {dimension_numbers = #tpu.dot_dimension_numbers<[1], [0], [0], [1], [0, 0, 1, 1], [], []>} : vector<8x128xbf16>, vector<128x512xbf16>, vector<8x512xf32> -> vector<8x512xf32>
    %c0_9 = arith.constant 0 : index
    %c0_10 = arith.constant 0 : index
    %40 = vector.load %arg5[%c0_9, %c0_10] : memref<1x512xf32, #tpu.memory_space<vmem>>, vector<1x512xf32>
    %41 = vector.broadcast %40 : vector<1x512xf32> to vector<8x512xf32>
    %42 = arith.addf %39, %41 : vector<8x512xf32>
    %cst_11 = arith.constant 0.000000e+00 : f32
    %43 = vector.broadcast %cst_11 : f32 to vector<8x512xf32>
    %44 = arith.maximumf %42, %43 : vector<8x512xf32>
    %45 = arith.truncf %44 : vector<8x512xf32> to vector<8x512xbf16>
    %c0_12 = arith.constant 0 : index
    %c0_13 = arith.constant 0 : index
    %46 = vector.load %arg6[%c0_12, %c0_13] : memref<512x128xbf16, #tpu.memory_space<vmem>>, vector<512x128xbf16>
    %cst_14 = arith.constant dense<0.000000e+00> : vector<8x128xf32>
    %47 = tpu.matmul %45, %46, %cst_14 {dimension_numbers = #tpu.dot_dimension_numbers<[1], [0], [0], [1], [0, 0, 1, 1], [], []>} : vector<8x512xbf16>, vector<512x128xbf16>, vector<8x128xf32> -> vector<8x128xf32>
    %c0_15 = arith.constant 0 : index
    %c0_16 = arith.constant 0 : index
    %48 = vector.load %arg7[%c0_15, %c0_16] : memref<1x128xf32, #tpu.memory_space<vmem>>, vector<1x128xf32>
    %49 = vector.broadcast %48 : vector<1x128xf32> to vector<8x128xf32>
    %50 = arith.addf %47, %49 : vector<8x128xf32>
    %cst_17 = arith.constant 0.000000e+00 : f32
    %51 = vector.broadcast %cst_17 : f32 to vector<8x128xf32>
    %52 = arith.maximumf %50, %51 : vector<8x128xf32>
    %53 = arith.truncf %52 : vector<8x128xf32> to vector<8x128xbf16>
    %c0_18 = arith.constant 0 : index
    %c0_19 = arith.constant 0 : index
    %54 = vector.load %arg8[%c0_18, %c0_19] : memref<128x128xbf16, #tpu.memory_space<vmem>>, vector<128x128xbf16>
    %cst_20 = arith.constant dense<0.000000e+00> : vector<8x128xf32>
    %55 = tpu.matmul %53, %54, %cst_20 {dimension_numbers = #tpu.dot_dimension_numbers<[1], [0], [0], [1], [0, 0, 1, 1], [], []>} : vector<8x128xbf16>, vector<128x128xbf16>, vector<8x128xf32> -> vector<8x128xf32>
    %c0_21 = arith.constant 0 : index
    %c0_22 = arith.constant 0 : index
    %56 = vector.load %arg9[%c0_21, %c0_22] : memref<1x128xf32, #tpu.memory_space<vmem>>, vector<1x128xf32>
    %57 = vector.broadcast %56 : vector<1x128xf32> to vector<8x128xf32>
    %58 = arith.addf %55, %57 : vector<8x128xf32>
    %c0_23 = arith.constant 0 : index
    %c0_24 = arith.constant 0 : index
    %59 = vector.load %arg10[%c0_23, %c0_24] : memref<8x128xf32, #tpu.memory_space<vmem>>, vector<8x128xf32>
    tpu.vector_store %arg10[%c0_23, %c0_24], %58 {strides = array<i32>} : memref<8x128xf32, #tpu.memory_space<vmem>>, vector<8x128xf32>,
    return
  }
  func.func @transform_0(%arg0: i32) -> (i32, i32) {
    %c0_i32 = arith.constant 0 : i32
    %c0_i32_0 = arith.constant 0 : i32
    return %arg0, %c0_i32 : i32, i32
  }
  func.func @transform_1(%arg0: i32) -> (i32, i32) {
    %c0_i32 = arith.constant 0 : i32
    %c0_i32_0 = arith.constant 0 : i32
    %c0_i32_1 = arith.constant 0 : i32
    return %c0_i32, %c0_i32_0 : i32, i32
  }
  func.func @transform_2(%arg0: i32) -> (i32, i32) {
    %c0_i32 = arith.constant 0 : i32
    %c0_i32_0 = arith.constant 0 : i32
    %c0_i32_1 = arith.constant 0 : i32
    return %c0_i32, %c0_i32_0 : i32, i32
  }
  func.func @transform_3(%arg0: i32) -> (i32, i32) {
    %c0_i32 = arith.constant 0 : i32
    %c0_i32_0 = arith.constant 0 : i32
    %c0_i32_1 = arith.constant 0 : i32
    return %c0_i32, %c0_i32_0 : i32, i32
  }
  func.func @transform_4(%arg0: i32) -> (i32, i32) {
    %c0_i32 = arith.constant 0 : i32
    %c0_i32_0 = arith.constant 0 : i32
    %c0_i32_1 = arith.constant 0 : i32
    return %c0_i32, %c0_i32_0 : i32, i32
  }
  func.func @transform_5(%arg0: i32) -> (i32, i32) {
    %c0_i32 = arith.constant 0 : i32
    %c0_i32_0 = arith.constant 0 : i32
    %c0_i32_1 = arith.constant 0 : i32
    return %c0_i32, %c0_i32_0 : i32, i32
  }
  func.func @transform_6(%arg0: i32) -> (i32, i32) {
    %c0_i32 = arith.constant 0 : i32
    %c0_i32_0 = arith.constant 0 : i32
    %c0_i32_1 = arith.constant 0 : i32
    return %c0_i32, %c0_i32_0 : i32, i32
  }
  func.func @transform_7(%arg0: i32) -> (i32, i32) {
    %c0_i32 = arith.constant 0 : i32
    %c0_i32_0 = arith.constant 0 : i32
    %c0_i32_1 = arith.constant 0 : i32
    return %c0_i32, %c0_i32_0 : i32, i32
  }
  func.func @transform_8(%arg0: i32) -> (i32, i32) {
    %c0_i32 = arith.constant 0 : i32
    %c0_i32_0 = arith.constant 0 : i32
    %c0_i32_1 = arith.constant 0 : i32
    return %c0_i32, %c0_i32_0 : i32, i32
  }
  func.func @transform_9(%arg0: i32) -> (i32, i32) {
    %c0_i32 = arith.constant 0 : i32
    %c0_i32_0 = arith.constant 0 : i32
    return %arg0, %c0_i32 : i32, i32
  }
}

</mosaic_0001>

<bundles_post_ra>
// kernel: tpu_custom_call.1
= control target key start
LH: loop header
LB: loop body
LE: loop exit
PB: predicated region body
PF: predicated region fallthrough
CT: control target
= control target key end

     0   :  { %s7494_s0 = inlined_call_operand.hbm [shape: bf16[16,512], index: 0, kind: input, shape index: {}]   ;;  %s7495_s1 = inlined_call_operand.hbm [shape: bf16[512,1920], index: 1, kind: input, shape index: {}]   ;;  %s7496_s2 = inlined_call_operand.hbm [shape: f32[1,1920], index: 2, kind: input, shape index: {}]   ;;  %s7497_s3 = inlined_call_operand.hbm [shape: bf16[128,512], index: 3, kind: input, shape index: {}]   ;;  %s7498_s4 = inlined_call_operand.hbm [shape: f32[1,512], index: 4, kind: input, shape index: {}]   ;;  %s7499_s5 = inlined_call_operand.hbm [shape: bf16[512,128], index: 5, kind: input, shape index: {}]   ;;  %s7500_s6 = inlined_call_operand.hbm [shape: f32[1,128], index: 6, kind: input, shape index: {}]   ;;  %s7501_s7 = inlined_call_operand.hbm [shape: bf16[128,128], index: 7, kind: input, shape index: {}]   ;;  %s7502_s8 = inlined_call_operand.hbm [shape: f32[1,128], index: 8, kind: input, shape index: {}]   ;;  %s7503_s9 = inlined_call_operand.hbm [shape: f32[16,128], index: 9, kind: output, shape index: {}]  }
   0x1   :  { %7508 = sst [smem:[#allocation24_spill]] %s7495_s1 }
   0x2   :  { %7509 = sst [smem:[#allocation25_spill]] %s7496_s2 }
   0x3   :  { %7510 = sst [smem:[#allocation26_spill]] %s7497_s3 }
   0x4   :  { %7511 = sst [smem:[#allocation27_spill]] %s7498_s4 }
   0x5   :  { %14 = vsyncpa [#allocation3], 0 }
   0x6   :  { %16 = vsyncpa [#allocation3 + $0x1], 0 }
   0x7   :  { %17 = vsyncpa [#allocation6], 0 }
   0x8   :  { %18 = vsyncpa [#allocation9], 0 }
   0x9   :  { %19 = vsyncpa [#allocation12], 0 }
   0xa   :  { %20 = vsyncpa [#allocation15], 0 }
   0xb   :  { %21 = vsyncpa [#allocation4], 0 }
   0xc   :  { %23 = vsyncpa [#allocation4 + $0x1], 0  ;;  %s7127_s30 = smov 0   ;;  %s7129_s10 = smov 0  }
   0xd   :  { %s7131_s11 = smov 0   ;;  %s7133_s12 = smov 0  }
   0xe LB: > { %s7058_s13 = smov [#allocation5]   ;;  %s7148_s15 = sadd.s32 4294967295, %s7056_s12   ;;  %s7056_s12 = sphi %s7133_s12, %s7541_s12   ;;  %s7052_s11 = sphi %s7131_s11, %s7540_s11   ;;  %s7048_s10 = sphi %s7129_s10, %s7539_s10   ;;  %s7044_s30 = sphi %s7127_s30, %s7538_s30  }
   0xf   : > { %s266_s14 = sshll.u32 %s7058_s13, 4  ;;  %p5103_p0 = scmp.ge.s32.totalorder %s7056_s12, 1  ;;  %s267_s14 = int_to_ptr.vmem [resolvable:$true] %s266_s14 }
  0x10   : > { %p7504_p1 = scmp.eq.s32.totalorder %s7148_s15, 0  ;;  %p254_p2 = scmp.lt.s32.totalorder %s7056_s12, 3 }
  0x11   : > { %s7059_s17 = smov [#allocation8]   ;;  %s7060_s20 = smov [#allocation11]  }
  0x12   : > { %p7153_p3 = pnand %p5103_p0, %p254_p2  ;;  %s290_s18 = sshll.u32 %s7059_s17, 4  ;;  %s7166_s18 = int_to_ptr.vmem [resolvable:$true] %s290_s18 }
  0x13   : > { %s7168_s21 = sshll.u32 %s7060_s20, 4  ;;  %s6751_s23 = scalar_lea.vmem %s267_s14, 61440  ;;  %s315_s21 = int_to_ptr.vmem [resolvable:$true] %s7168_s21 }
  0x14   : > { %s7512_s16 = scalar_select %p7153_p3, 1, 0 }
  0x15   : > { %p5843_p5 = pneg %p7153_p3  ;;  %p6752_p8 = scmp.ne.s32.totalorder %s267_s14, %s6751_s23 }
  0x16   : > { %p6759_p11 = scmp.lt.s32.totalorder %s267_s14, %s267_s14  ;;  %p6760_p12 = scmp.lt.s32.totalorder %s6751_s23, %s6751_s23 }
  0x17   : > { %p7162_p6 = pnand %p5843_p5, %p7504_p1 }
  0x18   : > { %p6761_p13 = por %p6760_p12, %p6759_p11 }
  0x19   : > { %p7172_p7 = pneg %p7162_p6 }
  0x1b   : > { %p6754_p9 = pnand %p6752_p8, %p7172_p7 }
  0x1d   : > { %p6755_p10 = pneg %p6754_p9 }
  0x1f   : > { %p6762_p0 = pnand %p6761_p13, %p6755_p10 }
  0x21   : > { %6765 = shalt.err (!%p6762_p0)
}
  0x22   : > { %s7061_s24 = smov 960   ;;  %s7062_s25 = smov 60  }
  0x23   : > { %s7515_s1 = sld [smem:[#allocation24_spill]]  ;;  %s6777_s28 = scalar_lea.vmem %s7166_s18, 4096 }
  0x24   : > { %p6778_p2 = scmp.ne.s32.totalorder %s7166_s18, %s6777_s28  ;;  %p6785_p9 = scmp.lt.s32.totalorder %s7166_s18, %s7166_s18 }
  0x25   : > { %p6786_p10 = scmp.lt.s32.totalorder %s6777_s28, %s6777_s28 }
  0x26   : > { %p6780_p5 = pnand %p6778_p2, %p7172_p7 }
  0x27   : > { %p6787_p11 = por %p6786_p10, %p6785_p9 }
  0x28   : > { %p6781_p8 = pneg %p6780_p5 }
  0x29   : > { %5846 = dma.hbm_to_vmem [thread:$0]  (!%p7162_p6), %s7515_s1, 61440, %s267_s14, [#allocation6], %s7061_s24, %s7061_s24, %s7062_s25  }
  0x2a   : > { %p6788_p12 = pnand %p6787_p11, %p6781_p8 }
  0x2c   : > { %6791 = shalt.err (!%p6788_p12)
}
  0x2d   : > { %s7063_s29 = smov 256   ;;  %s7064_s13 = smov 16  }
  0x2e   : > { %s7516_s3 = sld [smem:[#allocation26_spill]]  ;;  %s6803_s20 = scalar_lea.vmem %s315_s21, 4096 }
  0x2f   : > { %p6804_p13 = scmp.ne.s32.totalorder %s315_s21, %s6803_s20  ;;  %p6811_p5 = scmp.lt.s32.totalorder %s315_s21, %s315_s21 }
  0x30   : > { %p6812_p8 = scmp.lt.s32.totalorder %s6803_s20, %s6803_s20 }
  0x31   : > { %p6806_p0 = pnand %p6804_p13, %p7172_p7 }
  0x32   : > { %p6813_p9 = por %p6812_p8, %p6811_p5 }
  0x33   : > { %p6807_p2 = pneg %p6806_p0 }
  0x34   : > { %5852 = dma.hbm_to_vmem [thread:$0]  (!%p7162_p6), %s7516_s3, 4096, %s7166_s18, [#allocation9], %s7063_s29, %s7063_s29, %s7064_s13  }
  0x35   : > { %p6814_p10 = pnand %p6813_p9, %p6807_p2 }
  0x37   : > { %6817 = shalt.err (!%p6814_p10)
}
  0x38   : > { %s7065_s23 = smov 64   ;;  %s7066_s24 = smov 4  }
  0x39   : > { %5858 = dma.hbm_to_vmem [thread:$0]  (!%p7162_p6), %s7499_s5, 4096, %s315_s21, [#allocation12], %s7065_s23, %s7065_s23, %s7066_s24  }
  0x3a   : > { %s7067_s18 = smov [#allocation14]   ;;  %s7068_s28 = smov [#allocation7]  }
  0x3b   : > { %s338_s27 = sshll.u32 %s7067_s18, 4  ;;  %s280_s29 = sshll.u32 %s7068_s28, 4  ;;  %s339_s27 = int_to_ptr.vmem [resolvable:$true] %s338_s27  ;;  %s281_s29 = int_to_ptr.vmem [resolvable:$true] %s280_s29 }
  0x3c   : > { %s6829_s13 = scalar_lea.vmem %s339_s27, 1024  ;;  %p6837_p0 = scmp.lt.s32.totalorder %s339_s27, %s339_s27 }
  0x3d   : > { %p6830_p11 = scmp.ne.s32.totalorder %s339_s27, %s6829_s13  ;;  %p6838_p2 = scmp.lt.s32.totalorder %s6829_s13, %s6829_s13 }
  0x3f   : > { %p6832_p12 = pnand %p6830_p11, %p7172_p7  ;;  %p6839_p5 = por %p6838_p2, %p6837_p0 }
  0x41   : > { %p6833_p13 = pneg %p6832_p12 }
  0x43   : > { %p6840_p8 = pnand %p6839_p5, %p6833_p13 }
  0x45   : > { %6843 = shalt.err (!%p6840_p8)
}
  0x46   : > { %5864 = dma.hbm_to_vmem [thread:$0]  (!%p7162_p6), %s7501_s7, 1024, %s339_s27, [#allocation15], %s7065_s23, %s7065_s23, %s7066_s24  }
  0x47   : > { %s6855_s21 = scalar_lea.vmem %s281_s29, 240  ;;  %s6862_s20 = scalar_lea.vmem %s281_s29, 256 }
  0x48   : > { %p6856_p9 = scmp.ne.s32.totalorder %s281_s29, %s6855_s21  ;;  %p6863_p11 = scmp.lt.s32.totalorder %s281_s29, %s281_s29 }
  0x49   : > { %p6864_p12 = scmp.lt.s32.totalorder %s6862_s20, %s6855_s21 }
  0x4a   : > { %p6858_p10 = pnand %p6856_p9, %p7172_p7 }
  0x4b   : > { %p6865_p1 = por %p6864_p12, %p6863_p11 }
  0x4c   : > { %p6859_p4 = pneg %p6858_p10 }
  0x4e   : > { %p6866_p0 = pnand %p6865_p1, %p6859_p4 }
  0x50   : > { %6869 = shalt.err (!%p6866_p0)
}
  0x51   : > { %s7517_s2 = sld [smem:[#allocation25_spill]]  ;;  %s7069_s23 = smov [#allocation10]  }
  0x52   : > { %s304_s24 = sshll.u32 %s7069_s23, 4  ;;  %s7070_s18 = smov [#allocation13]   ;;  %s305_s24 = int_to_ptr.vmem [resolvable:$true] %s304_s24 }
  0x53   : > { %s328_s27 = sshll.u32 %s7070_s18, 4  ;;  %s6881_s28 = scalar_lea.vmem %s305_s24, 64  ;;  %s329_s27 = int_to_ptr.vmem [resolvable:$true] %s328_s27 }
  0x54   : > { %p6882_p13 = scmp.ne.s32.totalorder %s305_s24, %s6881_s28  ;;  %p6889_p8 = scmp.lt.s32.totalorder %s305_s24, %s305_s24 }
  0x55   : > { %p6890_p1 = scmp.lt.s32.totalorder %s6881_s28, %s6881_s28 }
  0x56   : > { %p6884_p2 = pnand %p6882_p13, %p7172_p7 }
  0x57   : > { %5849 = dma.hbm_to_vmem [thread:$0]  (!%p7162_p6), %s7517_s2, 240, %s281_s29, [#allocation6]  }
  0x58   : > { %p6885_p5 = pneg %p6884_p2  ;;  %p6891_p4 = por %p6890_p1, %p6889_p8 }
  0x5a   : > { %p6892_p9 = pnand %p6891_p4, %p6885_p5 }
  0x5c   : > { %6895 = shalt.err (!%p6892_p9)
}
  0x5d   : > { %s7518_s4 = sld [smem:[#allocation27_spill]]  ;;  %s6907_s29 = scalar_lea.vmem %s329_s27, 16 }
  0x5e   : > { %p6908_p10 = scmp.ne.s32.totalorder %s329_s27, %s6907_s29  ;;  %s6914_s14 = scalar_lea.vmem %s329_s27, 32 }
  0x5f   : > { %p6915_p0 = scmp.lt.s32.totalorder %s329_s27, %s329_s27  ;;  %p6916_p13 = scmp.lt.s32.totalorder %s6914_s14, %s6907_s29 }
  0x60   : > { %p6910_p11 = pnand %p6908_p10, %p7172_p7 }
  0x61   : > { %p6917_p2 = por %p6916_p13, %p6915_p0 }
  0x62   : > { %p6911_p12 = pneg %p6910_p11 }
  0x63   : > { %5855 = dma.hbm_to_vmem [thread:$0]  (!%p7162_p6), %s7518_s4, 64, %s305_s24, [#allocation9]  }
  0x64   : > { %p6918_p8 = pnand %p6917_p2, %p6911_p12 }
  0x66   : > { %6921 = shalt.err (!%p6918_p8)
}
  0x67   : > { %5861 = dma.hbm_to_vmem [thread:$0]  (!%p7162_p6), %s7500_s6, 16, %s329_s27, [#allocation12]  }
  0x68   : > { %s7071_s25 = smov [#allocation16]  }
  0x69   : > { %s352_s26 = sshll.u32 %s7071_s25, 4  ;;  %s353_s26 = int_to_ptr.vmem [resolvable:$true] %s352_s26 }
  0x6a   : > { %s6933_s23 = scalar_lea.vmem %s353_s26, 16  ;;  %s6940_s24 = scalar_lea.vmem %s353_s26, 32 }
  0x6b   : > { %p6934_p5 = scmp.ne.s32.totalorder %s353_s26, %s6933_s23  ;;  %p6941_p9 = scmp.lt.s32.totalorder %s353_s26, %s353_s26 }
  0x6c   : > { %p6942_p10 = scmp.lt.s32.totalorder %s6940_s24, %s6933_s23 }
  0x6d   : > { %p6936_p1 = pnand %p6934_p5, %p7172_p7 }
  0x6e   : > { %p6943_p11 = por %p6942_p10, %p6941_p9 }
  0x6f   : > { %p6937_p4 = pneg %p6936_p1 }
  0x71   : > { %p6944_p12 = pnand %p6943_p11, %p6937_p4 }
  0x73   : > { %6947 = shalt.err (!%p6944_p12)
}
  0x74   : > { %5867 = dma.hbm_to_vmem [thread:$0]  (!%p7162_p6), %s7502_s8, 16, %s353_s26, [#allocation15]  }
  0x75   : > { %s5102_s22 = sadd.s32 4294967294, %s7056_s12   ;;  %s7240_s19 = sadd.s32 1, %s7056_s12  }
  0x76   : > { %s33_s27 = ssub.s32 %s7056_s12, %s7240_s19  ;;  %s36_s13 = sadd.s32 1, %s7052_s11 }
  0x77   : > { %p34_p7 = scmp.eq.s32.totalorder %s33_s27, 0  ;;  %p43_p0 = scmp.ne.s32.totalorder %s7052_s11, %s7048_s10 }
  0x78   : > { %p44_p13 = scmp.eq.s32.totalorder %s7056_s12, 0  ;;  %p49_p2 = scmp.ne.s32.totalorder %s7048_s10, %s7044_s30 }
  0x79   : > { %s7251_s17 = scalar_select %p34_p7, %s7052_s11, %s36_s13  }
  0x7a   : > { %p7253_p8 = por %p44_p13, %p43_p0  ;;  %p7520_p5 = scmp.eq.s32.totalorder %s7148_s15, 0 }
  0x7b   : > { %p241_p1 = scmp.eq.s32.totalorder %s7148_s15, 1  ;;  %p247_p4 = scmp.eq.s32.totalorder %s5102_s22, 1 }
  0x7c   : > { %p7259_p6 = por %p7520_p5, %p49_p2  ;;  %p5884_p9 = scmp.lt.s32.totalorder %s7056_s12, 2 }
  0x7d   : > { %s363_s21 = sand.u32 1, %s7052_s11   ;;  %p7266_p10 = por %p241_p1, %p43_p0 }
  0x7e   : > { %s7521_s14 = scalar_select %p7259_p6, 1, 0 }
  0x7f   : > { %s7522_s20 = scalar_select %p7266_p10, 1, 0 }
  0x80   : > { %p7270_p11 = por %p247_p4, %p49_p2  ;;  %s5113_s26 = sshll.u32 %s363_s21, 4 }
  0x81   : > { %s5689_s23 = sshll.u32 %s7056_s12, 8  ;;  %s367_s22 = scalar_lea.vmem [#allocation2], %s5113_s26 }
  0x82   : > { %s7523_s25 = scalar_select %p7270_p11, 1, 0 }
  0x83   : > { %s7278_s28 = scalar_lea.hbm %s7494_s0, %s5689_s23  ;;  %s375_s27 = sshll.u32 %s367_s22, 4  ;;  %s376_s27 = int_to_ptr.vmem [resolvable:$true] %s375_s27 }
  0x84   : > { %p7282_p12 = pnand %p5884_p9, %p7253_p8  ;;  %s364_s1 = scalar_lea.sflag [#allocation3], %s363_s21 }
  0x85   : > { %s6948_s2 = scalar_lea.hbm %s7278_s28, 256  ;;  %s6953_s18 = scalar_lea.hbm %s7494_s0, 512 }
  0x86   : > { %p6949_p7 = scmp.ne.s32.totalorder %s7278_s28, %s6948_s2  ;;  %p6950_p0 = pneg %p7282_p12 }
  0x87   : > { %p6954_p5 = scmp.lt.s32.totalorder %s7278_s28, %s7494_s0  ;;  %p6955_p8 = scmp.lt.s32.totalorder %s6953_s18, %s6948_s2 }
  0x88   : > { %p6951_p13 = pnand %p6950_p0, %p6949_p7 }
  0x89   : > { %p6956_p1 = por %p6955_p8, %p6954_p5 }
  0x8a   : > { %p6952_p2 = pneg %p6951_p13 }
  0x8c   : > { %p6957_p4 = pnand %p6956_p1, %p6952_p2 }
  0x8e   : > { %6960 = shalt.err (!%p6957_p4)
}
  0x8f   : > { %s6961_s29 = scalar_lea.vmem %s376_s27, 256  ;;  %s7072_s21 = smov [#allocation2]  }
  0x90   : > { %p6962_p9 = scmp.ne.s32.totalorder %s376_s27, %s6961_s29  ;;  %s6966_s3 = sshll.u32 %s7072_s21, 4  ;;  %s6967_s3 = int_to_ptr.vmem [resolvable:$false] %s6966_s3 }
  0x91   : > { %s6968_s4 = scalar_lea.vmem %s6967_s3, 512  ;;  %p6969_p7 = scmp.lt.s32.totalorder %s376_s27, %s6967_s3 }
  0x92   : > { %p6964_p11 = pnand %p6962_p9, %p6950_p0  ;;  %p6970_p13 = scmp.lt.s32.totalorder %s6968_s4, %s6961_s29 }
  0x94   : > { %p6965_p10 = pneg %p6964_p11  ;;  %p6971_p6 = por %p6970_p13, %p6969_p7 }
  0x96   : > { %p6972_p3 = pnand %p6971_p6, %p6965_p10 }
  0x98   : > { %6975 = shalt.err (!%p6972_p3)
}
  0x99   : > { %5871 = dma.hbm_to_vmem [thread:$0]  (!%p7282_p12), %s7278_s28, 256, %s376_s27, %s364_s1  }
  0x9a   : > { %p7525_p2 = scmp.ne.s32.totalorder %s7512_s16, 0 }
  0x9b   : > { %s7303_s2 = sand.u32 (!%p7525_p2), 1, %s7048_s10   ;;  %p7526_p11 = scmp.ne.s32.totalorder (!%p7525_p2), %s7521_s14, 0 }
  0x9c   : > { %384 = sbr.rel (%p7525_p2) target bundleno = 1479 (0x5c7), region = 56  ;;  %s5117_s23 = sshll.u32 (!%p7525_p2), %s7303_s2, 4 }
  0x9d   : > { %s387_s24 = scalar_lea.sflag (!%p7525_p2), [#allocation3], %s7303_s2  ;;  %s7307_s3 = scalar_lea.vmem (!%p7525_p2), [#allocation2], %s5117_s23 }
  0xa1   : > { %7019 = dma.done.wait (%p7526_p11), %s387_s24, 256  }
  0xa2   : > { %7021 = vsyncadd (%p7526_p11), %s387_s24, 4294967040  ;;  %p7527_p3 = scmp.eq.s32.totalorder %s7148_s15, 0 }
  0xa4   : > { %7023 = dma.done.wait (%p7527_p3), [#allocation6], 61680   ;;  %p7528_p6 = pmov %p7527_p3 }
  0xa5   : > { %p7529_p10 = pmov %p7527_p3 }
  0xa6   : > { %7025 = vsyncadd (%p7528_p6), [#allocation6], 4294905616 }
  0xa7   : > { %7027 = dma.done.wait (%p7529_p10), [#allocation9], 4160   ;;  %p7530_p12 = pmov %p7527_p3 }
  0xa8   : > { %p7531_p0 = pmov %p7527_p3 }
  0xa9   : > { %7029 = vsyncadd (%p7530_p12), [#allocation9], 4294963136 }
  0xaa   : > { %7031 = dma.done.wait (%p7531_p0), [#allocation12], 4112   ;;  %p7532_p5 = pmov %p7531_p0 }
  0xab   : > { %p7533_p8 = pmov %p7531_p0 }
  0xac   : > { %7033 = vsyncadd (%p7532_p5), [#allocation12], 4294963184 }
  0xad   : > { %7035 = dma.done.wait (%p7533_p8), [#allocation15], 1040   ;;  %p7534_p1 = pmov %p7531_p0 }
  0xae   : > { %v5943_v0 = vld [vmem:[#allocation5 + $0x34c] ss:$60 sps:$4 sm:$0xff]   ;;  %v5949_v4 = vld [vmem:[#allocation5 + $0x2d4] ss:$60 sps:$4 sm:$0xff]   ;;  %v5955_v8 = vld [vmem:[#allocation5 + $0x25c] ss:$60 sps:$4 sm:$0xff]  }
  0xaf   : > { %7037 = vsyncadd (%p7534_p1), [#allocation15], 4294966256  ;;  %v5945_v1 = vld [vmem:[#allocation5 + $0xacc] ss:$60 sps:$4 sm:$0xff]   ;;  %3497 = vmatprep.subr.bf16.mxu0 %v5943_v0  ;;  %v5951_v5 = vld [vmem:[#allocation5 + $0xa54] ss:$60 sps:$4 sm:$0xff]  }
  0xb0   : > { %v5947_v2 = vld [vmem:[#allocation5 + $0x348] ss:$60 sps:$4 sm:$0xff]   ;;  %3538 = vmatprep.subr.bf16.mxu1 %v5945_v1  ;;  %v5953_v6 = vld [vmem:[#allocation5 + $0x2d0] ss:$60 sps:$4 sm:$0xff]   ;;  %v5957_v9 = vld [vmem:[#allocation5 + $0x9dc] ss:$60 sps:$4 sm:$0xff]  }
  0xb1   : > { %v5948_v3 = vld [vmem:[#allocation5 + $0xac8] ss:$60 sps:$4 sm:$0xff]   ;;  %3498 = vmatpush1.bf16.msra.mxu0 %v5947_v2  ;;  %v5954_v7 = vld [vmem:[#allocation5 + $0xa50] ss:$60 sps:$4 sm:$0xff]   ;;  %v5959_v10 = vld [vmem:[#allocation5 + $0x258] ss:$60 sps:$4 sm:$0xff]  }
  0xb2   : > { %3539 = vmatpush1.bf16.msra.mxu1 %v5948_v3  ;;  %3499 = vmatprep.subr.bf16.mxu0 %v5949_v4  ;;  %v5960_v11 = vld [vmem:[#allocation5 + $0x9d8] ss:$60 sps:$4 sm:$0xff]   ;;  %v5961_v12 = vld [vmem:[#allocation5 + $0x1e4] ss:$60 sps:$4 sm:$0xff]   ;;  %v5967_v16 = vld [vmem:[#allocation5 + $0x16c] ss:$60 sps:$4 sm:$0xff]  }
  0xb3   : > { %3540 = vmatprep.subr.bf16.mxu1 %v5951_v5  ;;  %v5963_v13 = vld [vmem:[#allocation5 + $0x964] ss:$60 sps:$4 sm:$0xff]   ;;  %v5969_v17 = vld [vmem:[#allocation5 + $0x8ec] ss:$60 sps:$4 sm:$0xff]   ;;  %v5973_v20 = vld [vmem:[#allocation5 + $0xf4] ss:$60 sps:$4 sm:$0xff]  }
  0xb4   : > { %v5965_v14 = vld [vmem:[#allocation5 + $0x1e0] ss:$60 sps:$4 sm:$0xff]   ;;  %v5971_v18 = vld [vmem:[#allocation5 + $0x168] ss:$60 sps:$4 sm:$0xff]   ;;  %v5975_v21 = vld [vmem:[#allocation5 + $0x874] ss:$60 sps:$4 sm:$0xff]  }
  0xb5   : > { %3500 = vmatpush1.bf16.msra.mxu0 %v5953_v6  ;;  %v5966_v15 = vld [vmem:[#allocation5 + $0x960] ss:$60 sps:$4 sm:$0xff]   ;;  %v5972_v19 = vld [vmem:[#allocation5 + $0x8e8] ss:$60 sps:$4 sm:$0xff]   ;;  %v5977_v22 = vld [vmem:[#allocation5 + $0xf0] ss:$60 sps:$4 sm:$0xff]  }
  0xb6   : > { %3541 = vmatpush1.bf16.msra.mxu1 %v5954_v7  ;;  %3501 = vmatprep.subr.bf16.mxu0 %v5955_v8  ;;  %v5978_v23 = vld [vmem:[#allocation5 + $0x870] ss:$60 sps:$4 sm:$0xff]   ;;  %v5979_v24 = vld [vmem:[#allocation5 + $0x7c] ss:$60 sps:$4 sm:$0xff]   ;;  %v5985_v28 = vld [vmem:[#allocation5 + $0x4] ss:$60 sps:$4 sm:$0xff]  }
  0xb7   : > { %3542 = vmatprep.subr.bf16.mxu1 %v5957_v9  ;;  %v5981_v25 = vld [vmem:[#allocation5 + $0x7fc] ss:$60 sps:$4 sm:$0xff]   ;;  %v5987_v29 = vld [vmem:[#allocation5 + $0x784] ss:$60 sps:$4 sm:$0xff]   ;;  %v5991_v32 = vld [vmem:[#allocation5 + $0x70c] ss:$60 sps:$4 sm:$0xff]  }
  0xb8   : > { %v5983_v26 = vld [vmem:[#allocation5 + $0x78] ss:$60 sps:$4 sm:$0xff]   ;;  %v5989_v30 = vld [vmem:[#allocation5] ss:$60 sps:$4 sm:$0xff]   ;;  %v5993_v33 = vld [vmem:[#allocation5 + $0xe8c] ss:$60 sps:$4 sm:$0xff]  }
  0xb9   : > { %3502 = vmatpush1.bf16.msra.mxu0 %v5959_v10  ;;  %v5984_v27 = vld [vmem:[#allocation5 + $0x7f8] ss:$60 sps:$4 sm:$0xff]   ;;  %v5990_v31 = vld [vmem:[#allocation5 + $0x780] ss:$60 sps:$4 sm:$0xff]   ;;  %v5995_v34 = vld [vmem:[#allocation5 + $0x708] ss:$60 sps:$4 sm:$0xff]  }
  0xba   : > { %3543 = vmatpush1.bf16.msra.mxu1 %v5960_v11  ;;  %3503 = vmatprep.subr.bf16.mxu0 %v5961_v12  ;;  %v5996_v35 = vld [vmem:[#allocation5 + $0xe88] ss:$60 sps:$4 sm:$0xff]   ;;  %v5997_v36 = vld [vmem:[#allocation5 + $0x694] ss:$60 sps:$4 sm:$0xff]   ;;  %v6003_v40 = vld [vmem:[#allocation5 + $0x61c] ss:$60 sps:$4 sm:$0xff]  }
  0xbb   : > { %3544 = vmatprep.subr.bf16.mxu1 %v5963_v13  ;;  %v5999_v37 = vld [vmem:[#allocation5 + $0xe14] ss:$60 sps:$4 sm:$0xff]   ;;  %v6005_v41 = vld [vmem:[#allocation5 + $0xd9c] ss:$60 sps:$4 sm:$0xff]   ;;  %v6009_v44 = vld [vmem:[#allocation5 + $0x5a4] ss:$60 sps:$4 sm:$0xff]  }
  0xbc   : > { %v6001_v38 = vld [vmem:[#allocation5 + $0x690] ss:$60 sps:$4 sm:$0xff]   ;;  %v6007_v42 = vld [vmem:[#allocation5 + $0x618] ss:$60 sps:$4 sm:$0xff]   ;;  %v6011_v45 = vld [vmem:[#allocation5 + $0xd24] ss:$60 sps:$4 sm:$0xff]  }
  0xbd   : > { %3504 = vmatpush1.bf16.msra.mxu0 %v5965_v14  ;;  %v6002_v39 = vld [vmem:[#allocation5 + $0xe10] ss:$60 sps:$4 sm:$0xff]   ;;  %v6008_v43 = vld [vmem:[#allocation5 + $0xd98] ss:$60 sps:$4 sm:$0xff]   ;;  %v6013_v49 = vld [vmem:[#allocation5 + $0x5a0] ss:$60 sps:$4 sm:$0xff]  }
  0xbe   : > { %3545 = vmatpush1.bf16.msra.mxu1 %v5966_v15  ;;  %3505 = vmatprep.subr.bf16.mxu0 %v5967_v16  ;;  %v458_v46 = vld [vmem:[%s7307_s3] sm:$0xff]  ;;  %v459_v48 = vld [vmem:[%s7307_s3 + $0x8] sm:$0xff]  ;;  %vm7075_vm0 = vmmov 0   ;;  %s5126_s1 = sshll.u32 %s7303_s2, 3  ;;  %s5686_s4 = sshll.u32 %s7148_s15, 7 }
  0xbf   : > { %3546 = vmatprep.subr.bf16.mxu1 %v5969_v17  ;;  %v7330_v47 = vcombine.high %v458_v46, %v458_v46  ;;  %v6014_v50 = vld [vmem:[#allocation5 + $0xd20] ss:$60 sps:$4 sm:$0xff]   ;;  %v7333_v51 = vcombine.high %v459_v48, %v459_v48  ;;  %v6015_v52 = vld [vmem:[#allocation5 + $0x52c] ss:$60 sps:$4 sm:$0xff]   ;;  %v6021_v56 = vld [vmem:[#allocation5 + $0x4b4] ss:$60 sps:$4 sm:$0xff]   ;;  %v7337_v6 = vcombine.low %v458_v46, %v458_v46  ;;  %v7339_v7 = vcombine.low %v459_v48, %v459_v48  ;;  %s7451_s13 = scalar_lea.hbm %s7503_s9, %s5686_s4 }
  0xc0   : > { %v6017_v53 = vld [vmem:[#allocation5 + $0xcac] ss:$60 sps:$4 sm:$0xff]   ;;  %v6023_v57 = vld [vmem:[#allocation5 + $0xc34] ss:$60 sps:$4 sm:$0xff]   ;;  %v6027_v60 = vld [vmem:[#allocation5 + $0x43c] ss:$60 sps:$4 sm:$0xff]  }
  0xc1   : > { %3506 = vmatpush1.bf16.msra.mxu0 %v5971_v18  ;;  %3529 = vmatprep.mubr.bf16.mxu0 %v7330_v47  ;;  %v6019_v54 = vld [vmem:[#allocation5 + $0x528] ss:$60 sps:$4 sm:$0xff]   ;;  %v6025_v58 = vld [vmem:[#allocation5 + $0x4b0] ss:$60 sps:$4 sm:$0xff]   ;;  %v6029_v61 = vld [vmem:[#allocation5 + $0xbbc] ss:$60 sps:$4 sm:$0xff]  }
  0xc2   : > { %3547 = vmatpush1.bf16.msra.mxu1 %v5972_v19  ;;  %3507 = vmatprep.subr.bf16.mxu0 %v5973_v20  ;;  %v6020_v55 = vld [vmem:[#allocation5 + $0xca8] ss:$60 sps:$4 sm:$0xff]   ;;  %v6026_v59 = vld [vmem:[#allocation5 + $0xc30] ss:$60 sps:$4 sm:$0xff]   ;;  %v6031_v62 = vld [vmem:[#allocation5 + $0x438] ss:$60 sps:$4 sm:$0xff]  }
  0xc3   : > { %3548 = vmatprep.subr.bf16.mxu1 %v5975_v21  ;;  %3570 = vmatprep.mubr.bf16.mxu1 %v7333_v51  ;;  %v6032_v63 = vld [vmem:[#allocation5 + $0xbb8] ss:$60 sps:$4 sm:$0xff]   ;;  %v6033_v0 = vld [vmem:[#allocation5 + $0x3c4] ss:$60 sps:$4 sm:$0xff]   ;;  %v6043_v8 = vld [vmem:[#allocation5 + $0x350] ss:$60 sps:$4 sm:$0xff]  }
  0xc4   : > { %v6035_v1 = vld [vmem:[#allocation5 + $0xb44] ss:$60 sps:$4 sm:$0xff]   ;;  %v6045_v4 = vld [vmem:[#allocation5 + $0x354] ss:$60 sps:$4 sm:$0xff]   ;;  %v6051_v10 = vld [vmem:[#allocation5 + $0x2dc] ss:$60 sps:$4 sm:$0xff]  }
  0xc5   : > { %3508 = vmatpush1.bf16.msra.mxu0 %v5977_v22  ;;  %v6037_v2 = vld [vmem:[#allocation5 + $0x3c0] ss:$60 sps:$4 sm:$0xff]   ;;  %v6048_v5 = vld [vmem:[#allocation5 + $0xad4] ss:$60 sps:$4 sm:$0xff]   ;;  %v6063_v18 = vld [vmem:[#allocation5 + $0x1ec] ss:$60 sps:$4 sm:$0xff]  }
  0xc6   : > { %3549 = vmatpush1.bf16.msra.mxu1 %v5978_v23  ;;  %3509 = vmatprep.subr.bf16.mxu0 %v5979_v24  ;;  %v6038_v3 = vld [vmem:[#allocation5 + $0xb40] ss:$60 sps:$4 sm:$0xff]   ;;  %v6046_v9 = vld [vmem:[#allocation5 + $0xad0] ss:$60 sps:$4 sm:$0xff]   ;;  %v6049_v12 = vld [vmem:[#allocation5 + $0x2d8] ss:$60 sps:$4 sm:$0xff]  }
  0xc7   : > { %3550 = vmatprep.subr.bf16.mxu1 %v5981_v25  ;;  %v6054_v11 = vld [vmem:[#allocation5 + $0xa5c] ss:$60 sps:$4 sm:$0xff]   ;;  %v6057_v14 = vld [vmem:[#allocation5 + $0x264] ss:$60 sps:$4 sm:$0xff]   ;;  %v6066_v19 = vld [vmem:[#allocation5 + $0x96c] ss:$60 sps:$4 sm:$0xff]  }
  0xc8   : > { %v6052_v13 = vld [vmem:[#allocation5 + $0xa58] ss:$60 sps:$4 sm:$0xff]   ;;  %v6060_v15 = vld [vmem:[#allocation5 + $0x9e4] ss:$60 sps:$4 sm:$0xff]   ;;  %v6067_v24 = vld [vmem:[#allocation5 + $0x170] ss:$60 sps:$4 sm:$0xff]  }
  0xc9   : > { %3510 = vmatpush1.bf16.msra.mxu0 %v5983_v26  ;;  %v6055_v16 = vld [vmem:[#allocation5 + $0x260] ss:$60 sps:$4 sm:$0xff]   ;;  %v6061_v20 = vld [vmem:[#allocation5 + $0x1e8] ss:$60 sps:$4 sm:$0xff]   ;;  %v6069_v22 = vld [vmem:[#allocation5 + $0x174] ss:$60 sps:$4 sm:$0xff]  }
  0xca   : > { %3551 = vmatpush1.bf16.msra.mxu1 %v5984_v27  ;;  %3511 = vmatprep.subr.bf16.mxu0 %v5985_v28  ;;  %v6058_v17 = vld [vmem:[#allocation5 + $0x9e0] ss:$60 sps:$4 sm:$0xff]   ;;  %v6064_v21 = vld [vmem:[#allocation5 + $0x968] ss:$60 sps:$4 sm:$0xff]   ;;  %v6072_v23 = vld [vmem:[#allocation5 + $0x8f4] ss:$60 sps:$4 sm:$0xff]  }
  0xcb   : > { %3552 = vmatprep.subr.bf16.mxu1 %v5987_v29  ;;  %v6070_v25 = vld [vmem:[#allocation5 + $0x8f0] ss:$60 sps:$4 sm:$0xff]   ;;  %v6075_v26 = vld [vmem:[#allocation5 + $0xfc] ss:$60 sps:$4 sm:$0xff]   ;;  %v6105_v46 = vld [vmem:[#allocation5 + $0x624] ss:$60 sps:$4 sm:$0xff]  }
  0xcc   : > { %v6078_v27 = vld [vmem:[#allocation5 + $0x87c] ss:$60 sps:$4 sm:$0xff]   ;;  %v6108_v48 = vld [vmem:[#allocation5 + $0xda4] ss:$60 sps:$4 sm:$0xff]   ;;  %s456_s16 = scalar_lea.vmem [#allocation17], %s5126_s1  ;;  %s4943_s18 = scalar_lea.sflag [#allocation4], %s7303_s2 }
  0xcd   : > { %3512 = vmatpush1.bf16.msra.mxu0 %v5989_v30  ;;  %v6073_v28 = vld [vmem:[#allocation5 + $0xf8] ss:$60 sps:$4 sm:$0xff]   ;;  %v6081_v30 = vld [vmem:[#allocation5 + $0x84] ss:$60 sps:$4 sm:$0xff]   ;;  %s4956_s14 = sshll.u32 %s456_s16, 4  ;;  %p7535_p9 = scmp.ne.s32.totalorder %s7522_s20, 0  ;;  %s7453_s14 = int_to_ptr.vmem [resolvable:$true] %s4956_s14 }
  0xce   : > { %3553 = vmatpush1.bf16.msra.mxu1 %v5990_v31  ;;  %3513 = vmatprep.subr.bf16.mxu0 %v5991_v32  ;;  %v6076_v29 = vld [vmem:[#allocation5 + $0x878] ss:$60 sps:$4 sm:$0xff]   ;;  %v6084_v31 = vld [vmem:[#allocation5 + $0x804] ss:$60 sps:$4 sm:$0xff]   ;;  %s6976_s26 = scalar_lea.vmem %s7453_s14, 128  ;;  %s7076_s15 = smov [#allocation17]  }
  0xcf   : > { %3554 = vmatprep.subr.bf16.mxu1 %v5993_v33  ;;  %v6079_v32 = vld [vmem:[#allocation5 + $0x80] ss:$60 sps:$4 sm:$0xff]   ;;  %p6977_p4 = scmp.ne.s32.totalorder %s7453_s14, %s6976_s26  ;;  %s6980_s22 = sshll.u32 %s7076_s15, 4  ;;  %s6981_s22 = int_to_ptr.vmem [resolvable:$false] %s6980_s22 }
  0xd0   : > { %v6082_v33 = vld [vmem:[#allocation5 + $0x800] ss:$60 sps:$4 sm:$0xff]   ;;  %s6982_s29 = scalar_lea.vmem %s6981_s22, 256  ;;  %p6983_p2 = scmp.lt.s32.totalorder %s7453_s14, %s6981_s22 }
  0xd1   : > { %3514 = vmatpush2.bf16.msra.mxu0 %v5995_v34  ;;  %v6087_v34 = vld [vmem:[#allocation5 + $0xc] ss:$60 sps:$4 sm:$0xff]   ;;  %p6978_p7 = pnand %p6977_p4, %p7535_p9  ;;  %p6984_p11 = scmp.lt.s32.totalorder %s6982_s29, %s6976_s26 }
  0xd2   : > { %3555 = vmatpush2.bf16.msra.mxu1 %v5996_v35  ;;  %3515 = vmatprep.subr.bf16.mxu0 %v5997_v36  ;;  %v6090_v35 = vld [vmem:[#allocation5 + $0x78c] ss:$60 sps:$4 sm:$0xff]  }
  0xd3   : > { %3556 = vmatprep.subr.bf16.mxu1 %v5999_v37  ;;  %v6085_v36 = vld [vmem:[#allocation5 + $0x8] ss:$60 sps:$4 sm:$0xff]   ;;  %p6979_p13 = pneg %p6978_p7  ;;  %p6985_p3 = por %p6984_p11, %p6983_p2 }
  0xd4   : > { %v6088_v37 = vld [vmem:[#allocation5 + $0x788] ss:$60 sps:$4 sm:$0xff]  }
  0xd5   : > { %3516 = vmatpush2.bf16.msra.mxu0 %v6001_v38  ;;  %v6093_v38 = vld [vmem:[#allocation5 + $0x714] ss:$60 sps:$4 sm:$0xff]   ;;  %p6986_p6 = pnand %p6985_p3, %p6979_p13 }
  0xd6   : > { %3557 = vmatpush2.bf16.msra.mxu1 %v6002_v39  ;;  %3517 = vmatprep.subr.bf16.mxu0 %v6003_v40  ;;  %v6096_v39 = vld [vmem:[#allocation5 + $0xe94] ss:$60 sps:$4 sm:$0xff]  }
  0xd7   : > { %3558 = vmatprep.subr.bf16.mxu1 %v6005_v41  ;;  %v6091_v40 = vld [vmem:[#allocation5 + $0x710] ss:$60 sps:$4 sm:$0xff]  }
  0xd8   : > { %v6094_v41 = vld [vmem:[#allocation5 + $0xe90] ss:$60 sps:$4 sm:$0xff]  }
  0xd9   : > { %3518 = vmatpush2.bf16.msra.mxu0 %v6007_v42  ;;  %v6099_v42 = vld [vmem:[#allocation5 + $0x69c] ss:$60 sps:$4 sm:$0xff]  }
  0xda   : > { %3559 = vmatpush2.bf16.msra.mxu1 %v6008_v43  ;;  %3519 = vmatprep.subr.bf16.mxu0 %v6009_v44  ;;  %v6102_v43 = vld [vmem:[#allocation5 + $0xe1c] ss:$60 sps:$4 sm:$0xff]  }
  0xdb   : > { %3560 = vmatprep.subr.bf16.mxu1 %v6011_v45  ;;  %v6097_v44 = vld [vmem:[#allocation5 + $0x698] ss:$60 sps:$4 sm:$0xff]  }
  0xdc   : > { %v6100_v45 = vld [vmem:[#allocation5 + $0xe18] ss:$60 sps:$4 sm:$0xff]  }
  0xdd   : > { %3520 = vmatpush2.bf16.msra.mxu0 %v6013_v49  ;;  %v6103_v49 = vld [vmem:[#allocation5 + $0x620] ss:$60 sps:$4 sm:$0xff]  }
  0xde   : > { %3561 = vmatpush2.bf16.msra.mxu1 %v6014_v50  ;;  %3521 = vmatprep.subr.bf16.mxu0 %v6015_v52  ;;  %v6106_v50 = vld [vmem:[#allocation5 + $0xda0] ss:$60 sps:$4 sm:$0xff]   ;;  %v6111_v52 = vld [vmem:[#allocation5 + $0x5ac] ss:$60 sps:$4 sm:$0xff]  }
  0xdf   : > { %3562 = vmatprep.subr.bf16.mxu1 %v6017_v53  ;;  %v6114_v53 = vld [vmem:[#allocation5 + $0xd2c] ss:$60 sps:$4 sm:$0xff]  }
  0xe1   : > { %3522 = vmatpush2.bf16.msra.mxu0 %v6019_v54  ;;  %v6109_v54 = vld [vmem:[#allocation5 + $0x5a8] ss:$60 sps:$4 sm:$0xff]  }
  0xe2   : > { %3563 = vmatpush2.bf16.msra.mxu1 %v6020_v55  ;;  %3523 = vmatprep.subr.bf16.mxu0 %v6021_v56  ;;  %v6112_v55 = vld [vmem:[#allocation5 + $0xd28] ss:$60 sps:$4 sm:$0xff]   ;;  %v6117_v56 = vld [vmem:[#allocation5 + $0x534] ss:$60 sps:$4 sm:$0xff]  }
  0xe3   : > { %3564 = vmatprep.subr.bf16.mxu1 %v6023_v57  ;;  %v6120_v57 = vld [vmem:[#allocation5 + $0xcb4] ss:$60 sps:$4 sm:$0xff]  }
  0xe5   : > { %3524 = vmatpush2.bf16.msra.mxu0 %v6025_v58  ;;  %v6115_v58 = vld [vmem:[#allocation5 + $0x530] ss:$60 sps:$4 sm:$0xff]  }
  0xe6   : > { %3565 = vmatpush2.bf16.msra.mxu1 %v6026_v59  ;;  %3525 = vmatprep.subr.bf16.mxu0 %v6027_v60  ;;  %v6118_v59 = vld [vmem:[#allocation5 + $0xcb0] ss:$60 sps:$4 sm:$0xff]   ;;  %v6123_v60 = vld [vmem:[#allocation5 + $0x4bc] ss:$60 sps:$4 sm:$0xff]  }
  0xe7   : > { %3566 = vmatprep.subr.bf16.mxu1 %v6029_v61  ;;  %v6126_v61 = vld [vmem:[#allocation5 + $0xc3c] ss:$60 sps:$4 sm:$0xff]  }
  0xe9   : > { %3526 = vmatpush2.bf16.msra.mxu0 %v6031_v62  ;;  %v6121_v62 = vld [vmem:[#allocation5 + $0x4b8] ss:$60 sps:$4 sm:$0xff]  }
  0xea   : > { %3567 = vmatpush2.bf16.msra.mxu1 %v6032_v63  ;;  %3527 = vmatprep.subr.bf16.mxu0 %v6033_v0  ;;  %v6124_v63 = vld [vmem:[#allocation5 + $0xc38] ss:$60 sps:$4 sm:$0xff]   ;;  %v6129_v0 = vld [vmem:[#allocation5 + $0x444] ss:$60 sps:$4 sm:$0xff]  }
  0xeb   : > { %3568 = vmatprep.subr.bf16.mxu1 %v6035_v1  ;;  %v6132_v1 = vld [vmem:[#allocation5 + $0xbc4] ss:$60 sps:$4 sm:$0xff]  }
  0xed   : > { %3528 = vmatpush2.bf16.msra.mxu0 %v6037_v2  ;;  %v6127_v2 = vld [vmem:[#allocation5 + $0x440] ss:$60 sps:$4 sm:$0xff]  }
  0xee   : > { %3569 = vmatpush2.bf16.msra.mxu1 %v6038_v3  ;;  %3579 = vmatprep.subr.bf16.mxu0 %v6045_v4  ;;  %v6130_v3 = vld [vmem:[#allocation5 + $0xbc0] ss:$60 sps:$4 sm:$0xff]   ;;  %v6135_v4 = vld [vmem:[#allocation5 + $0x3cc] ss:$60 sps:$4 sm:$0xff]  }
  0xef   : > { %3620 = vmatprep.subr.bf16.mxu1 %v6048_v5  ;;  %v6138_v5 = vld [vmem:[#allocation5 + $0xb4c] ss:$60 sps:$4 sm:$0xff]  }
  0xf0   : > { %3530 = vmatmul.mubr.bf16.vlgmr.msra.gmra.mxu0 %v7337_v6 }
  0xf1   : > { %3571 = vmatmul.mubr.bf16.vlgmr.msra.gmra.mxu1 %v7339_v7  ;;  %3580 = vmatpush1.bf16.msra.mxu0 %v6043_v8  ;;  %v6133_v8 = vld [vmem:[#allocation5 + $0x3c8] ss:$60 sps:$4 sm:$0xff]  }
  0xf2   : > { %3621 = vmatpush1.bf16.msra.mxu1 %v6046_v9  ;;  %3581 = vmatprep.subr.bf16.mxu0 %v6051_v10  ;;  %v6136_v9 = vld [vmem:[#allocation5 + $0xb48] ss:$60 sps:$4 sm:$0xff]   ;;  %v6141_v10 = vld [vmem:[#allocation5 + $0x35c] ss:$60 sps:$4 sm:$0xff]  }
  0xf3   : > { %3622 = vmatprep.subr.bf16.mxu1 %v6054_v11  ;;  %3611 = vmatprep.mubr.bf16.mxu0 %v7330_v47  ;;  %v6144_v11 = vld [vmem:[#allocation5 + $0xadc] ss:$60 sps:$4 sm:$0xff]  }
  0xf4   : > { %3652 = vmatprep.mubr.bf16.mxu1 %v7333_v51 }
  0xf5   : > { %3582 = vmatpush1.bf16.msra.mxu0 %v6049_v12  ;;  %v6139_v12 = vld [vmem:[#allocation5 + $0x358] ss:$60 sps:$4 sm:$0xff]  }
  0xf6   : > { %3623 = vmatpush1.bf16.msra.mxu1 %v6052_v13  ;;  %3583 = vmatprep.subr.bf16.mxu0 %v6057_v14  ;;  %v6142_v13 = vld [vmem:[#allocation5 + $0xad8] ss:$60 sps:$4 sm:$0xff]   ;;  %v6147_v14 = vld [vmem:[#allocation5 + $0x2e4] ss:$60 sps:$4 sm:$0xff]  }
  0xf7   : > { %3624 = vmatprep.subr.bf16.mxu1 %v6060_v15  ;;  %v6150_v15 = vld [vmem:[#allocation5 + $0xa64] ss:$60 sps:$4 sm:$0xff]  }
  0xf9   : > { %3584 = vmatpush1.bf16.msra.mxu0 %v6055_v16  ;;  %v6145_v16 = vld [vmem:[#allocation5 + $0x2e0] ss:$60 sps:$4 sm:$0xff]  }
  0xfa   : > { %3625 = vmatpush1.bf16.msra.mxu1 %v6058_v17  ;;  %3585 = vmatprep.subr.bf16.mxu0 %v6063_v18  ;;  %v6148_v17 = vld [vmem:[#allocation5 + $0xa60] ss:$60 sps:$4 sm:$0xff]   ;;  %v6153_v18 = vld [vmem:[#allocation5 + $0x26c] ss:$60 sps:$4 sm:$0xff]  }
  0xfb   : > { %3626 = vmatprep.subr.bf16.mxu1 %v6066_v19  ;;  %v6156_v19 = vld [vmem:[#allocation5 + $0x9ec] ss:$60 sps:$4 sm:$0xff]  }
  0xfd   : > { %3586 = vmatpush1.bf16.msra.mxu0 %v6061_v20  ;;  %v6151_v20 = vld [vmem:[#allocation5 + $0x268] ss:$60 sps:$4 sm:$0xff]  }
  0xfe   : > { %3627 = vmatpush1.bf16.msra.mxu1 %v6064_v21  ;;  %3587 = vmatprep.subr.bf16.mxu0 %v6069_v22  ;;  %v6154_v21 = vld [vmem:[#allocation5 + $0x9e8] ss:$60 sps:$4 sm:$0xff]   ;;  %v6159_v22 = vld [vmem:[#allocation5 + $0x1f4] ss:$60 sps:$4 sm:$0xff]  }
  0xff   : > { %3628 = vmatprep.subr.bf16.mxu1 %v6072_v23  ;;  %v6162_v23 = vld [vmem:[#allocation5 + $0x974] ss:$60 sps:$4 sm:$0xff]  }
 0x101   : > { %3588 = vmatpush1.bf16.msra.mxu0 %v6067_v24  ;;  %v6157_v24 = vld [vmem:[#allocation5 + $0x1f0] ss:$60 sps:$4 sm:$0xff]  }
 0x102   : > { %3629 = vmatpush1.bf16.msra.mxu1 %v6070_v25  ;;  %3589 = vmatprep.subr.bf16.mxu0 %v6075_v26  ;;  %v6160_v25 = vld [vmem:[#allocation5 + $0x970] ss:$60 sps:$4 sm:$0xff]   ;;  %v6165_v26 = vld [vmem:[#allocation5 + $0x17c] ss:$60 sps:$4 sm:$0xff]  }
 0x103   : > { %3630 = vmatprep.subr.bf16.mxu1 %v6078_v27  ;;  %v6168_v27 = vld [vmem:[#allocation5 + $0x8fc] ss:$60 sps:$4 sm:$0xff]  }
 0x105   : > { %3590 = vmatpush1.bf16.msra.mxu0 %v6073_v28  ;;  %v6163_v28 = vld [vmem:[#allocation5 + $0x178] ss:$60 sps:$4 sm:$0xff]  }
 0x106   : > { %3631 = vmatpush1.bf16.msra.mxu1 %v6076_v29  ;;  %3591 = vmatprep.subr.bf16.mxu0 %v6081_v30  ;;  %v6166_v29 = vld [vmem:[#allocation5 + $0x8f8] ss:$60 sps:$4 sm:$0xff]   ;;  %v6171_v30 = vld [vmem:[#allocation5 + $0x104] ss:$60 sps:$4 sm:$0xff]  }
 0x107   : > { %3632 = vmatprep.subr.bf16.mxu1 %v6084_v31  ;;  %v6174_v31 = vld [vmem:[#allocation5 + $0x884] ss:$60 sps:$4 sm:$0xff]  }
 0x109   : > { %3592 = vmatpush1.bf16.msra.mxu0 %v6079_v32  ;;  %v6169_v32 = vld [vmem:[#allocation5 + $0x100] ss:$60 sps:$4 sm:$0xff]  }
 0x10a   : > { %3633 = vmatpush1.bf16.msra.mxu1 %v6082_v33  ;;  %3593 = vmatprep.subr.bf16.mxu0 %v6087_v34  ;;  %v6172_v33 = vld [vmem:[#allocation5 + $0x880] ss:$60 sps:$4 sm:$0xff]   ;;  %v6177_v34 = vld [vmem:[#allocation5 + $0x8c] ss:$60 sps:$4 sm:$0xff]  }
 0x10b   : > { %3634 = vmatprep.subr.bf16.mxu1 %v6090_v35  ;;  %v6180_v35 = vld [vmem:[#allocation5 + $0x80c] ss:$60 sps:$4 sm:$0xff]  }
 0x10d   : > { %3594 = vmatpush1.bf16.msra.mxu0 %v6085_v36  ;;  %v6175_v36 = vld [vmem:[#allocation5 + $0x88] ss:$60 sps:$4 sm:$0xff]  }
 0x10e   : > { %3635 = vmatpush1.bf16.msra.mxu1 %v6088_v37  ;;  %3595 = vmatprep.subr.bf16.mxu0 %v6093_v38  ;;  %v6178_v37 = vld [vmem:[#allocation5 + $0x808] ss:$60 sps:$4 sm:$0xff]   ;;  %v6183_v38 = vld [vmem:[#allocation5 + $0x14] ss:$60 sps:$4 sm:$0xff]  }
 0x10f   : > { %3636 = vmatprep.subr.bf16.mxu1 %v6096_v39  ;;  %v6186_v39 = vld [vmem:[#allocation5 + $0x794] ss:$60 sps:$4 sm:$0xff]  }
 0x111   : > { %3596 = vmatpush2.bf16.msra.mxu0 %v6091_v40  ;;  %v6181_v40 = vld [vmem:[#allocation5 + $0x10] ss:$60 sps:$4 sm:$0xff]  }
 0x112   : > { %3637 = vmatpush2.bf16.msra.mxu1 %v6094_v41  ;;  %3597 = vmatprep.subr.bf16.mxu0 %v6099_v42  ;;  %v6184_v41 = vld [vmem:[#allocation5 + $0x790] ss:$60 sps:$4 sm:$0xff]   ;;  %v6189_v42 = vld [vmem:[#allocation5 + $0x71c] ss:$60 sps:$4 sm:$0xff]  }
 0x113   : > { %3638 = vmatprep.subr.bf16.mxu1 %v6102_v43  ;;  %v6192_v43 = vld [vmem:[#allocation5 + $0xe9c] ss:$60 sps:$4 sm:$0xff]  }
 0x115   : > { %3598 = vmatpush2.bf16.msra.mxu0 %v6097_v44  ;;  %v6187_v44 = vld [vmem:[#allocation5 + $0x718] ss:$60 sps:$4 sm:$0xff]  }
 0x116   : > { %3639 = vmatpush2.bf16.msra.mxu1 %v6100_v45  ;;  %3599 = vmatprep.subr.bf16.mxu0 %v6105_v46  ;;  %v6190_v45 = vld [vmem:[#allocation5 + $0xe98] ss:$60 sps:$4 sm:$0xff]   ;;  %v6195_v46 = vld [vmem:[#allocation5 + $0x6a4] ss:$60 sps:$4 sm:$0xff]  }
 0x117   : > { %3640 = vmatprep.subr.bf16.mxu1 %v6108_v48  ;;  %v6198_v48 = vld [vmem:[#allocation5 + $0xe24] ss:$60 sps:$4 sm:$0xff]  }
 0x119   : > { %3600 = vmatpush2.bf16.msra.mxu0 %v6103_v49  ;;  %v6193_v49 = vld [vmem:[#allocation5 + $0x6a0] ss:$60 sps:$4 sm:$0xff]  }
 0x11a   : > { %3641 = vmatpush2.bf16.msra.mxu1 %v6106_v50  ;;  %3601 = vmatprep.subr.bf16.mxu0 %v6111_v52  ;;  %v6196_v50 = vld [vmem:[#allocation5 + $0xe20] ss:$60 sps:$4 sm:$0xff]   ;;  %v6201_v52 = vld [vmem:[#allocation5 + $0x62c] ss:$60 sps:$4 sm:$0xff]  }
 0x11b   : > { %3642 = vmatprep.subr.bf16.mxu1 %v6114_v53  ;;  %v6204_v53 = vld [vmem:[#allocation5 + $0xdac] ss:$60 sps:$4 sm:$0xff]  }
 0x11d   : > { %3602 = vmatpush2.bf16.msra.mxu0 %v6109_v54  ;;  %v6199_v54 = vld [vmem:[#allocation5 + $0x628] ss:$60 sps:$4 sm:$0xff]  }
 0x11e   : > { %3643 = vmatpush2.bf16.msra.mxu1 %v6112_v55  ;;  %3603 = vmatprep.subr.bf16.mxu0 %v6117_v56  ;;  %v6202_v55 = vld [vmem:[#allocation5 + $0xda8] ss:$60 sps:$4 sm:$0xff]   ;;  %v6207_v56 = vld [vmem:[#allocation5 + $0x5b4] ss:$60 sps:$4 sm:$0xff]  }
 0x11f   : > { %3644 = vmatprep.subr.bf16.mxu1 %v6120_v57  ;;  %v6210_v57 = vld [vmem:[#allocation5 + $0xd34] ss:$60 sps:$4 sm:$0xff]  }
 0x121   : > { %3604 = vmatpush2.bf16.msra.mxu0 %v6115_v58  ;;  %v6205_v58 = vld [vmem:[#allocation5 + $0x5b0] ss:$60 sps:$4 sm:$0xff]  }
 0x122   : > { %3645 = vmatpush2.bf16.msra.mxu1 %v6118_v59  ;;  %3605 = vmatprep.subr.bf16.mxu0 %v6123_v60  ;;  %v6208_v59 = vld [vmem:[#allocation5 + $0xd30] ss:$60 sps:$4 sm:$0xff]   ;;  %v6213_v60 = vld [vmem:[#allocation5 + $0x53c] ss:$60 sps:$4 sm:$0xff]  }
 0x123   : > { %3646 = vmatprep.subr.bf16.mxu1 %v6126_v61  ;;  %v6216_v61 = vld [vmem:[#allocation5 + $0xcbc] ss:$60 sps:$4 sm:$0xff]  }
 0x125   : > { %3606 = vmatpush2.bf16.msra.mxu0 %v6121_v62  ;;  %v6211_v62 = vld [vmem:[#allocation5 + $0x538] ss:$60 sps:$4 sm:$0xff]  }
 0x126   : > { %3647 = vmatpush2.bf16.msra.mxu1 %v6124_v63  ;;  %3607 = vmatprep.subr.bf16.mxu0 %v6129_v0  ;;  %v6214_v63 = vld [vmem:[#allocation5 + $0xcb8] ss:$60 sps:$4 sm:$0xff]   ;;  %v6219_v0 = vld [vmem:[#allocation5 + $0x4c4] ss:$60 sps:$4 sm:$0xff]  }
 0x127   : > { %3648 = vmatprep.subr.bf16.mxu1 %v6132_v1  ;;  %v6222_v1 = vld [vmem:[#allocation5 + $0xc44] ss:$60 sps:$4 sm:$0xff]  }
 0x129   : > { %3608 = vmatpush2.bf16.msra.mxu0 %v6127_v2  ;;  %v6217_v2 = vld [vmem:[#allocation5 + $0x4c0] ss:$60 sps:$4 sm:$0xff]  }
 0x12a   : > { %3649 = vmatpush2.bf16.msra.mxu1 %v6130_v3  ;;  %3609 = vmatprep.subr.bf16.mxu0 %v6135_v4  ;;  %v6220_v3 = vld [vmem:[#allocation5 + $0xc40] ss:$60 sps:$4 sm:$0xff]   ;;  %v6225_v4 = vld [vmem:[#allocation5 + $0x44c] ss:$60 sps:$4 sm:$0xff]  }
 0x12b   : > { %3650 = vmatprep.subr.bf16.mxu1 %v6138_v5  ;;  %v6228_v5 = vld [vmem:[#allocation5 + $0xbcc] ss:$60 sps:$4 sm:$0xff]  }
 0x12d   : > { %3610 = vmatpush2.bf16.msra.mxu0 %v6133_v8  ;;  %v6223_v8 = vld [vmem:[#allocation5 + $0x448] ss:$60 sps:$4 sm:$0xff]  }
 0x12e   : > { %3651 = vmatpush2.bf16.msra.mxu1 %v6136_v9  ;;  %3661 = vmatprep.subr.bf16.mxu0 %v6141_v10  ;;  %v6226_v9 = vld [vmem:[#allocation5 + $0xbc8] ss:$60 sps:$4 sm:$0xff]   ;;  %v6231_v10 = vld [vmem:[#allocation5 + $0x3d4] ss:$60 sps:$4 sm:$0xff]  }
 0x12f   : > { %3702 = vmatprep.subr.bf16.mxu1 %v6144_v11  ;;  %v6234_v11 = vld [vmem:[#allocation5 + $0xb54] ss:$60 sps:$4 sm:$0xff]  }
 0x130   : > { %3612 = vmatmul.mubr.bf16.vlgmr.msra.gmra.mxu0 %v7337_v6 }
 0x131   : > { %3653 = vmatmul.mubr.bf16.vlgmr.msra.gmra.mxu1 %v7339_v7  ;;  %3662 = vmatpush1.bf16.msra.mxu0 %v6139_v12  ;;  %v6229_v12 = vld [vmem:[#allocation5 + $0x3d0] ss:$60 sps:$4 sm:$0xff]  }
 0x132   : > { %3703 = vmatpush1.bf16.msra.mxu1 %v6142_v13  ;;  %3663 = vmatprep.subr.bf16.mxu0 %v6147_v14  ;;  %v6232_v13 = vld [vmem:[#allocation5 + $0xb50] ss:$60 sps:$4 sm:$0xff]   ;;  %v6237_v14 = vld [vmem:[#allocation5 + $0x364] ss:$60 sps:$4 sm:$0xff]  }
 0x133   : > { %3704 = vmatprep.subr.bf16.mxu1 %v6150_v15  ;;  %3693 = vmatprep.mubr.bf16.mxu0 %v7330_v47  ;;  %v6240_v15 = vld [vmem:[#allocation5 + $0xae4] ss:$60 sps:$4 sm:$0xff]  }
 0x134   : > { %3734 = vmatprep.mubr.bf16.mxu1 %v7333_v51 }
 0x135   : > { %3664 = vmatpush1.bf16.msra.mxu0 %v6145_v16  ;;  %v6235_v16 = vld [vmem:[#allocation5 + $0x360] ss:$60 sps:$4 sm:$0xff]  }
 0x136   : > { %3705 = vmatpush1.bf16.msra.mxu1 %v6148_v17  ;;  %3665 = vmatprep.subr.bf16.mxu0 %v6153_v18  ;;  %v6238_v17 = vld [vmem:[#allocation5 + $0xae0] ss:$60 sps:$4 sm:$0xff]   ;;  %v6243_v18 = vld [vmem:[#allocation5 + $0x2ec] ss:$60 sps:$4 sm:$0xff]  }
 0x137   : > { %3706 = vmatprep.subr.bf16.mxu1 %v6156_v19  ;;  %v6246_v19 = vld [vmem:[#allocation5 + $0xa6c] ss:$60 sps:$4 sm:$0xff]  }
 0x139   : > { %3666 = vmatpush1.bf16.msra.mxu0 %v6151_v20  ;;  %v6241_v20 = vld [vmem:[#allocation5 + $0x2e8] ss:$60 sps:$4 sm:$0xff]  }
 0x13a   : > { %3707 = vmatpush1.bf16.msra.mxu1 %v6154_v21  ;;  %3667 = vmatprep.subr.bf16.mxu0 %v6159_v22  ;;  %v6244_v21 = vld [vmem:[#allocation5 + $0xa68] ss:$60 sps:$4 sm:$0xff]   ;;  %v6249_v22 = vld [vmem:[#allocation5 + $0x274] ss:$60 sps:$4 sm:$0xff]  }
 0x13b   : > { %3708 = vmatprep.subr.bf16.mxu1 %v6162_v23  ;;  %v6252_v23 = vld [vmem:[#allocation5 + $0x9f4] ss:$60 sps:$4 sm:$0xff]  }
 0x13d   : > { %3668 = vmatpush1.bf16.msra.mxu0 %v6157_v24  ;;  %v6247_v24 = vld [vmem:[#allocation5 + $0x270] ss:$60 sps:$4 sm:$0xff]  }
 0x13e   : > { %3709 = vmatpush1.bf16.msra.mxu1 %v6160_v25  ;;  %3669 = vmatprep.subr.bf16.mxu0 %v6165_v26  ;;  %v6250_v25 = vld [vmem:[#allocation5 + $0x9f0] ss:$60 sps:$4 sm:$0xff]   ;;  %v6255_v26 = vld [vmem:[#allocation5 + $0x1fc] ss:$60 sps:$4 sm:$0xff]  }
 0x13f   : > { %3710 = vmatprep.subr.bf16.mxu1 %v6168_v27  ;;  %v6258_v27 = vld [vmem:[#allocation5 + $0x97c] ss:$60 sps:$4 sm:$0xff]  }
 0x141   : > { %3670 = vmatpush1.bf16.msra.mxu0 %v6163_v28  ;;  %v6253_v28 = vld [vmem:[#allocation5 + $0x1f8] ss:$60 sps:$4 sm:$0xff]  }
 0x142   : > { %3711 = vmatpush1.bf16.msra.mxu1 %v6166_v29  ;;  %3671 = vmatprep.subr.bf16.mxu0 %v6171_v30  ;;  %v6256_v29 = vld [vmem:[#allocation5 + $0x978] ss:$60 sps:$4 sm:$0xff]   ;;  %v6261_v30 = vld [vmem:[#allocation5 + $0x184] ss:$60 sps:$4 sm:$0xff]  }
 0x143   : > { %3712 = vmatprep.subr.bf16.mxu1 %v6174_v31  ;;  %v6264_v31 = vld [vmem:[#allocation5 + $0x904] ss:$60 sps:$4 sm:$0xff]  }
 0x145   : > { %3672 = vmatpush1.bf16.msra.mxu0 %v6169_v32  ;;  %v6259_v32 = vld [vmem:[#allocation5 + $0x180] ss:$60 sps:$4 sm:$0xff]  }
 0x146   : > { %3713 = vmatpush1.bf16.msra.mxu1 %v6172_v33  ;;  %3673 = vmatprep.subr.bf16.mxu0 %v6177_v34  ;;  %v6262_v33 = vld [vmem:[#allocation5 + $0x900] ss:$60 sps:$4 sm:$0xff]   ;;  %v6267_v34 = vld [vmem:[#allocation5 + $0x10c] ss:$60 sps:$4 sm:$0xff]  }
 0x147   : > { %3714 = vmatprep.subr.bf16.mxu1 %v6180_v35  ;;  %v6270_v35 = vld [vmem:[#allocation5 + $0x88c] ss:$60 sps:$4 sm:$0xff]  }
 0x149   : > { %3674 = vmatpush1.bf16.msra.mxu0 %v6175_v36  ;;  %v6265_v36 = vld [vmem:[#allocation5 + $0x108] ss:$60 sps:$4 sm:$0xff]  }
 0x14a   : > { %3715 = vmatpush1.bf16.msra.mxu1 %v6178_v37  ;;  %3675 = vmatprep.subr.bf16.mxu0 %v6183_v38  ;;  %v6268_v37 = vld [vmem:[#allocation5 + $0x888] ss:$60 sps:$4 sm:$0xff]   ;;  %v6273_v38 = vld [vmem:[#allocation5 + $0x94] ss:$60 sps:$4 sm:$0xff]  }
 0x14b   : > { %3716 = vmatprep.subr.bf16.mxu1 %v6186_v39  ;;  %v6276_v39 = vld [vmem:[#allocation5 + $0x814] ss:$60 sps:$4 sm:$0xff]  }
 0x14d   : > { %3676 = vmatpush1.bf16.msra.mxu0 %v6181_v40  ;;  %v6271_v40 = vld [vmem:[#allocation5 + $0x90] ss:$60 sps:$4 sm:$0xff]  }
 0x14e   : > { %3717 = vmatpush1.bf16.msra.mxu1 %v6184_v41  ;;  %3677 = vmatprep.subr.bf16.mxu0 %v6189_v42  ;;  %v6274_v41 = vld [vmem:[#allocation5 + $0x810] ss:$60 sps:$4 sm:$0xff]   ;;  %v6279_v42 = vld [vmem:[#allocation5 + $0x1c] ss:$60 sps:$4 sm:$0xff]  }
 0x14f   : > { %3718 = vmatprep.subr.bf16.mxu1 %v6192_v43  ;;  %v6282_v43 = vld [vmem:[#allocation5 + $0x79c] ss:$60 sps:$4 sm:$0xff]  }
 0x151   : > { %3678 = vmatpush2.bf16.msra.mxu0 %v6187_v44  ;;  %v6277_v44 = vld [vmem:[#allocation5 + $0x18] ss:$60 sps:$4 sm:$0xff]  }
 0x152   : > { %3719 = vmatpush2.bf16.msra.mxu1 %v6190_v45  ;;  %3679 = vmatprep.subr.bf16.mxu0 %v6195_v46  ;;  %v6280_v45 = vld [vmem:[#allocation5 + $0x798] ss:$60 sps:$4 sm:$0xff]   ;;  %v6285_v46 = vld [vmem:[#allocation5 + $0x724] ss:$60 sps:$4 sm:$0xff]  }
 0x153   : > { %3720 = vmatprep.subr.bf16.mxu1 %v6198_v48  ;;  %v6288_v48 = vld [vmem:[#allocation5 + $0xea4] ss:$60 sps:$4 sm:$0xff]  }
 0x155   : > { %3680 = vmatpush2.bf16.msra.mxu0 %v6193_v49  ;;  %v6283_v49 = vld [vmem:[#allocation5 + $0x720] ss:$60 sps:$4 sm:$0xff]  }
 0x156   : > { %3721 = vmatpush2.bf16.msra.mxu1 %v6196_v50  ;;  %3681 = vmatprep.subr.bf16.mxu0 %v6201_v52  ;;  %v6286_v50 = vld [vmem:[#allocation5 + $0xea0] ss:$60 sps:$4 sm:$0xff]   ;;  %v6291_v52 = vld [vmem:[#allocation5 + $0x6ac] ss:$60 sps:$4 sm:$0xff]  }
 0x157   : > { %3722 = vmatprep.subr.bf16.mxu1 %v6204_v53  ;;  %v6294_v53 = vld [vmem:[#allocation5 + $0xe2c] ss:$60 sps:$4 sm:$0xff]  }
 0x159   : > { %3682 = vmatpush2.bf16.msra.mxu0 %v6199_v54  ;;  %v6289_v54 = vld [vmem:[#allocation5 + $0x6a8] ss:$60 sps:$4 sm:$0xff]  }
 0x15a   : > { %3723 = vmatpush2.bf16.msra.mxu1 %v6202_v55  ;;  %3683 = vmatprep.subr.bf16.mxu0 %v6207_v56  ;;  %v6292_v55 = vld [vmem:[#allocation5 + $0xe28] ss:$60 sps:$4 sm:$0xff]   ;;  %v6297_v56 = vld [vmem:[#allocation5 + $0x634] ss:$60 sps:$4 sm:$0xff]  }
 0x15b   : > { %3724 = vmatprep.subr.bf16.mxu1 %v6210_v57  ;;  %v6300_v57 = vld [vmem:[#allocation5 + $0xdb4] ss:$60 sps:$4 sm:$0xff]  }
 0x15d   : > { %3684 = vmatpush2.bf16.msra.mxu0 %v6205_v58  ;;  %v6295_v58 = vld [vmem:[#allocation5 + $0x630] ss:$60 sps:$4 sm:$0xff]  }
 0x15e   : > { %3725 = vmatpush2.bf16.msra.mxu1 %v6208_v59  ;;  %3685 = vmatprep.subr.bf16.mxu0 %v6213_v60  ;;  %v6298_v59 = vld [vmem:[#allocation5 + $0xdb0] ss:$60 sps:$4 sm:$0xff]   ;;  %v6303_v60 = vld [vmem:[#allocation5 + $0x5bc] ss:$60 sps:$4 sm:$0xff]  }
 0x15f   : > { %3726 = vmatprep.subr.bf16.mxu1 %v6216_v61  ;;  %v6306_v61 = vld [vmem:[#allocation5 + $0xd3c] ss:$60 sps:$4 sm:$0xff]  }
 0x161   : > { %3686 = vmatpush2.bf16.msra.mxu0 %v6211_v62  ;;  %v6301_v62 = vld [vmem:[#allocation5 + $0x5b8] ss:$60 sps:$4 sm:$0xff]  }
 0x162   : > { %3727 = vmatpush2.bf16.msra.mxu1 %v6214_v63  ;;  %3687 = vmatprep.subr.bf16.mxu0 %v6219_v0  ;;  %v6304_v63 = vld [vmem:[#allocation5 + $0xd38] ss:$60 sps:$4 sm:$0xff]   ;;  %v6309_v0 = vld [vmem:[#allocation5 + $0x544] ss:$60 sps:$4 sm:$0xff]  }
 0x163   : > { %3728 = vmatprep.subr.bf16.mxu1 %v6222_v1  ;;  %v6312_v1 = vld [vmem:[#allocation5 + $0xcc4] ss:$60 sps:$4 sm:$0xff]  }
 0x165   : > { %3688 = vmatpush2.bf16.msra.mxu0 %v6217_v2  ;;  %v6307_v2 = vld [vmem:[#allocation5 + $0x540] ss:$60 sps:$4 sm:$0xff]  }
 0x166   : > { %3729 = vmatpush2.bf16.msra.mxu1 %v6220_v3  ;;  %3689 = vmatprep.subr.bf16.mxu0 %v6225_v4  ;;  %v6310_v3 = vld [vmem:[#allocation5 + $0xcc0] ss:$60 sps:$4 sm:$0xff]   ;;  %v6315_v4 = vld [vmem:[#allocation5 + $0x4cc] ss:$60 sps:$4 sm:$0xff]  }
 0x167   : > { %3730 = vmatprep.subr.bf16.mxu1 %v6228_v5  ;;  %v6318_v5 = vld [vmem:[#allocation5 + $0xc4c] ss:$60 sps:$4 sm:$0xff]  }
 0x169   : > { %3690 = vmatpush2.bf16.msra.mxu0 %v6223_v8  ;;  %v6313_v8 = vld [vmem:[#allocation5 + $0x4c8] ss:$60 sps:$4 sm:$0xff]  }
 0x16a   : > { %3731 = vmatpush2.bf16.msra.mxu1 %v6226_v9  ;;  %3691 = vmatprep.subr.bf16.mxu0 %v6231_v10  ;;  %v6316_v9 = vld [vmem:[#allocation5 + $0xc48] ss:$60 sps:$4 sm:$0xff]   ;;  %v6321_v10 = vld [vmem:[#allocation5 + $0x454] ss:$60 sps:$4 sm:$0xff]  }
 0x16b   : > { %3732 = vmatprep.subr.bf16.mxu1 %v6234_v11  ;;  %v976_v11 = vlaneseq }
 0x16d   : > { %3692 = vmatpush2.bf16.msra.mxu0 %v6229_v12  ;;  %v6324_v12 = vld [vmem:[#allocation5 + $0xbd4] ss:$60 sps:$4 sm:$0xff]  }
 0x16e   : > { %3733 = vmatpush2.bf16.msra.mxu1 %v6232_v13  ;;  %3743 = vmatprep.subr.bf16.mxu0 %v6237_v14  ;;  %v6319_v13 = vld [vmem:[#allocation5 + $0x450] ss:$60 sps:$4 sm:$0xff]  }
 0x16f   : > { %3784 = vmatprep.subr.bf16.mxu1 %v6240_v15  ;;  %v6322_v14 = vld [vmem:[#allocation5 + $0xbd0] ss:$60 sps:$4 sm:$0xff]   ;;  %v6327_v15 = vld [vmem:[#allocation5 + $0x3dc] ss:$60 sps:$4 sm:$0xff]  }
 0x170   : > { %3694 = vmatmul.mubr.bf16.vlgmr.msra.gmra.mxu0 %v7337_v6 }
 0x171   : > { %3735 = vmatmul.mubr.bf16.vlgmr.msra.gmra.mxu1 %v7339_v7  ;;  %3744 = vmatpush1.bf16.msra.mxu0 %v6235_v16  ;;  %v7353_v16 = vshrl.u32 %v976_v11, 7  ;;  %v6376_v11 = vld [vmem:[#allocation5 + $0x7a0] ss:$60 sps:$4 sm:$0xff]  }
 0x172   : > { %3785 = vmatpush1.bf16.msra.mxu1 %v6238_v17  ;;  %3745 = vmatprep.subr.bf16.mxu0 %v6243_v18  ;;  %v6330_v17 = vld [vmem:[#allocation5 + $0xb5c] ss:$60 sps:$4 sm:$0xff]  }
 0x173   : > { %3786 = vmatprep.subr.bf16.mxu1 %v6246_v19  ;;  %3775 = vmatprep.mubr.bf16.mxu0 %v7330_v47  ;;  %v6325_v18 = vld [vmem:[#allocation5 + $0x3d8] ss:$60 sps:$4 sm:$0xff]  }
 0x174   : > { %3816 = vmatprep.mubr.bf16.mxu1 %v7333_v51  ;;  %v6328_v19 = vld [vmem:[#allocation5 + $0xb58] ss:$60 sps:$4 sm:$0xff]  }
 0x175   : > { %3746 = vmatpush1.bf16.msra.mxu0 %v6241_v20  ;;  %v7355_v20 = vld [vmem:[#allocation7] sm:$0xff] }
 0x176   : > { %3787 = vmatpush1.bf16.msra.mxu1 %v6244_v21  ;;  %3747 = vmatprep.subr.bf16.mxu0 %v6249_v22  ;;  %v7358_v21 = vsub.s32 0, %v7353_v16  ;;  %v6333_v22 = vld [vmem:[#allocation5 + $0x36c] ss:$60 sps:$4 sm:$0xff]  }
 0x177   : > { %3788 = vmatprep.subr.bf16.mxu1 %v6252_v23  ;;  %v6336_v23 = vld [vmem:[#allocation5 + $0xaec] ss:$60 sps:$4 sm:$0xff]  }
 0x179   : > { %3748 = vmatpush1.bf16.msra.mxu0 %v6247_v24  ;;  %v7361_v24 = vsub.s32 1, %v7353_v16 }
 0x17a   : > { %3789 = vmatpush1.bf16.msra.mxu1 %v6250_v25  ;;  %3749 = vmatprep.subr.bf16.mxu0 %v6255_v26  ;;  %v6331_v25 = vld [vmem:[#allocation5 + $0x368] ss:$60 sps:$4 sm:$0xff]   ;;  %v979_v26 = vrot.slane %v7355_v20, %v7358_v21 }
 0x17b   : > { %3790 = vmatprep.subr.bf16.mxu1 %v6258_v27  ;;  %v6334_v27 = vld [vmem:[#allocation5 + $0xae8] ss:$60 sps:$4 sm:$0xff]  }
 0x17d   : > { %3750 = vmatpush1.bf16.msra.mxu0 %v6253_v28  ;;  %v6339_v28 = vld [vmem:[#allocation5 + $0x2f4] ss:$60 sps:$4 sm:$0xff]  }
 0x17e   : > { %3791 = vmatpush1.bf16.msra.mxu1 %v6256_v29  ;;  %3751 = vmatprep.subr.bf16.mxu0 %v6261_v30  ;;  %v6342_v29 = vld [vmem:[#allocation5 + $0xa74] ss:$60 sps:$4 sm:$0xff]   ;;  %v983_v30 = vrot.slane %v7355_v20, %v7361_v24 }
 0x17f   : > { %3792 = vmatprep.subr.bf16.mxu1 %v6264_v31 }
 0x181   : > { %3752 = vmatpush1.bf16.msra.mxu0 %v6259_v32 }
 0x182   : > { %3793 = vmatpush1.bf16.msra.mxu1 %v6262_v33  ;;  %3753 = vmatprep.subr.bf16.mxu0 %v6267_v34  ;;  %v6337_v33 = vld [vmem:[#allocation5 + $0x2f0] ss:$60 sps:$4 sm:$0xff]  }
 0x183   : > { %3794 = vmatprep.subr.bf16.mxu1 %v6270_v35  ;;  %v6340_v34 = vld [vmem:[#allocation5 + $0xa70] ss:$60 sps:$4 sm:$0xff]  }
 0x185   : > { %3754 = vmatpush1.bf16.msra.mxu0 %v6265_v36 }
 0x186   : > { %3795 = vmatpush1.bf16.msra.mxu1 %v6268_v37  ;;  %3755 = vmatprep.subr.bf16.mxu0 %v6273_v38  ;;  %v6345_v38 = vld [vmem:[#allocation5 + $0x27c] ss:$60 sps:$4 sm:$0xff]  }
 0x187   : > { %3796 = vmatprep.subr.bf16.mxu1 %v6276_v39  ;;  %v6348_v39 = vld [vmem:[#allocation5 + $0x9fc] ss:$60 sps:$4 sm:$0xff]  }
 0x189   : > { %3756 = vmatpush1.bf16.msra.mxu0 %v6271_v40 }
 0x18a   : > { %3797 = vmatpush1.bf16.msra.mxu1 %v6274_v41  ;;  %3757 = vmatprep.subr.bf16.mxu0 %v6279_v42  ;;  %v6343_v42 = vld [vmem:[#allocation5 + $0x278] ss:$60 sps:$4 sm:$0xff]  }
 0x18b   : > { %3798 = vmatprep.subr.bf16.mxu1 %v6282_v43  ;;  %v6346_v43 = vld [vmem:[#allocation5 + $0x9f8] ss:$60 sps:$4 sm:$0xff]  }
 0x18d   : > { %3758 = vmatpush1.bf16.msra.mxu0 %v6277_v44 }
 0x18e   : > { %3799 = vmatpush1.bf16.msra.mxu1 %v6280_v45  ;;  %3759 = vmatprep.subr.bf16.mxu0 %v6285_v46 }
 0x18f   : > { %3800 = vmatprep.subr.bf16.mxu1 %v6288_v48 }
 0x191   : > { %3760 = vmatpush2.bf16.msra.mxu0 %v6283_v49 }
 0x192   : > { %3801 = vmatpush2.bf16.msra.mxu1 %v6286_v50  ;;  %3761 = vmatprep.subr.bf16.mxu0 %v6291_v52  ;;  %v6351_v52 = vld [vmem:[#allocation5 + $0x204] ss:$60 sps:$4 sm:$0xff]  }
 0x193   : > { %3802 = vmatprep.subr.bf16.mxu1 %v6294_v53  ;;  %v6354_v53 = vld [vmem:[#allocation5 + $0x984] ss:$60 sps:$4 sm:$0xff]  }
 0x195   : > { %3762 = vmatpush2.bf16.msra.mxu0 %v6289_v54 }
 0x196   : > { %3803 = vmatpush2.bf16.msra.mxu1 %v6292_v55  ;;  %3763 = vmatprep.subr.bf16.mxu0 %v6297_v56  ;;  %v6349_v56 = vld [vmem:[#allocation5 + $0x200] ss:$60 sps:$4 sm:$0xff]  }
 0x197   : > { %3804 = vmatprep.subr.bf16.mxu1 %v6300_v57  ;;  %v6352_v57 = vld [vmem:[#allocation5 + $0x980] ss:$60 sps:$4 sm:$0xff]  }
 0x199   : > { %3764 = vmatpush2.bf16.msra.mxu0 %v6295_v58  ;;  %v6357_v58 = vld [vmem:[#allocation5 + $0x18c] ss:$60 sps:$4 sm:$0xff]  }
 0x19a   : > { %3805 = vmatpush2.bf16.msra.mxu1 %v6298_v59  ;;  %3765 = vmatprep.subr.bf16.mxu0 %v6303_v60  ;;  %v6360_v59 = vld [vmem:[#allocation5 + $0x90c] ss:$60 sps:$4 sm:$0xff]  }
 0x19b   : > { %3806 = vmatprep.subr.bf16.mxu1 %v6306_v61  ;;  %v6355_v60 = vld [vmem:[#allocation5 + $0x188] ss:$60 sps:$4 sm:$0xff]  }
 0x19c   : > { %v6358_v61 = vld [vmem:[#allocation5 + $0x908] ss:$60 sps:$4 sm:$0xff]  }
 0x19d   : > { %3766 = vmatpush2.bf16.msra.mxu0 %v6301_v62  ;;  %v6363_v62 = vld [vmem:[#allocation5 + $0x114] ss:$60 sps:$4 sm:$0xff]  }
 0x19e   : > { %3807 = vmatpush2.bf16.msra.mxu1 %v6304_v63  ;;  %3767 = vmatprep.subr.bf16.mxu0 %v6309_v0  ;;  %v6366_v63 = vld [vmem:[#allocation5 + $0x894] ss:$60 sps:$4 sm:$0xff]  }
 0x19f   : > { %3808 = vmatprep.subr.bf16.mxu1 %v6312_v1  ;;  %v6361_v0 = vld [vmem:[#allocation5 + $0x110] ss:$60 sps:$4 sm:$0xff]  }
 0x1a0   : > { %v6364_v1 = vld [vmem:[#allocation5 + $0x890] ss:$60 sps:$4 sm:$0xff]  }
 0x1a1   : > { %3768 = vmatpush2.bf16.msra.mxu0 %v6307_v2  ;;  %v6369_v2 = vld [vmem:[#allocation5 + $0x9c] ss:$60 sps:$4 sm:$0xff]  }
 0x1a2   : > { %3809 = vmatpush2.bf16.msra.mxu1 %v6310_v3  ;;  %3769 = vmatprep.subr.bf16.mxu0 %v6315_v4  ;;  %v6372_v3 = vld [vmem:[#allocation5 + $0x81c] ss:$60 sps:$4 sm:$0xff]  }
 0x1a3   : > { %3810 = vmatprep.subr.bf16.mxu1 %v6318_v5  ;;  %v6367_v4 = vld [vmem:[#allocation5 + $0x98] ss:$60 sps:$4 sm:$0xff]  }
 0x1a4   : > { %v6370_v5 = vld [vmem:[#allocation5 + $0x818] ss:$60 sps:$4 sm:$0xff]  }
 0x1a5   : > { %3770 = vmatpush2.bf16.msra.mxu0 %v6313_v8  ;;  %v6375_v8 = vld [vmem:[#allocation5 + $0x24] ss:$60 sps:$4 sm:$0xff]  }
 0x1a6   : > { %3811 = vmatpush2.bf16.msra.mxu1 %v6316_v9  ;;  %3771 = vmatprep.subr.bf16.mxu0 %v6321_v10  ;;  %v6378_v9 = vld [vmem:[#allocation5 + $0x7a4] ss:$60 sps:$4 sm:$0xff]  }
 0x1a7   : > { %3812 = vmatprep.subr.bf16.mxu1 %v6324_v12  ;;  %v6373_v10 = vld [vmem:[#allocation5 + $0x20] ss:$60 sps:$4 sm:$0xff]   ;;  %v6381_v12 = vld [vmem:[#allocation5 + $0x72c] ss:$60 sps:$4 sm:$0xff]  }
 0x1a9   : > { %3772 = vmatpush2.bf16.msra.mxu0 %v6319_v13  ;;  %v6384_v13 = vld [vmem:[#allocation5 + $0xeac] ss:$60 sps:$4 sm:$0xff]  }
 0x1aa   : > { %3813 = vmatpush2.bf16.msra.mxu1 %v6322_v14  ;;  %3773 = vmatprep.subr.bf16.mxu0 %v6327_v15  ;;  %v6379_v14 = vld [vmem:[#allocation5 + $0x728] ss:$60 sps:$4 sm:$0xff]  }
 0x1ab   : > { %3814 = vmatprep.subr.bf16.mxu1 %v6330_v17  ;;  %v6382_v15 = vld [vmem:[#allocation5 + $0xea8] ss:$60 sps:$4 sm:$0xff]   ;;  %v6387_v17 = vld [vmem:[#allocation5 + $0x6b4] ss:$60 sps:$4 sm:$0xff]  }
 0x1ad   : > { %3774 = vmatpush2.bf16.msra.mxu0 %v6325_v18  ;;  %v6390_v18 = vld [vmem:[#allocation5 + $0xe34] ss:$60 sps:$4 sm:$0xff]  }
 0x1ae   : > { %3815 = vmatpush2.bf16.msra.mxu1 %v6328_v19  ;;  %3825 = vmatprep.subr.bf16.mxu0 %v6333_v22  ;;  %v7374_v19 = vsub.s32 2, %v7353_v16  ;;  %v7377_v22 = vsub.s32 3, %v7353_v16 }
 0x1af   : > { %3866 = vmatprep.subr.bf16.mxu1 %v6336_v23  ;;  %v6385_v23 = vld [vmem:[#allocation5 + $0x6b0] ss:$60 sps:$4 sm:$0xff]  }
 0x1b0   : > { %v3531_v31 = vpop.f32.mrf.mxu0  ;;  %3776 = vmatmul.mubr.bf16.vlgmr.msra.gmra.mxu0 %v7337_v6 }
 0x1b1   : > { %v3572_v32 = vpop.f32.mrf.mxu1  ;;  %3817 = vmatmul.mubr.bf16.vlgmr.msra.gmra.mxu1 %v7339_v7  ;;  %v3532_v35 = vadd.f32 %v3531_v31, %v979_v26  ;;  %3826 = vmatpush1.bf16.msra.mxu0 %v6331_v25  ;;  %v6388_v25 = vld [vmem:[#allocation5 + $0xe30] ss:$60 sps:$4 sm:$0xff]   ;;  %v6393_v26 = vld [vmem:[#allocation5 + $0x63c] ss:$60 sps:$4 sm:$0xff]   ;;  %v6402_v31 = vld [vmem:[#allocation5 + $0xd44] ss:$60 sps:$4 sm:$0xff]  }
 0x1b2   : > { %3867 = vmatpush1.bf16.msra.mxu1 %v6334_v27  ;;  %v3533_v36 = vpop.f32.mrf.mxu0  ;;  %3827 = vmatprep.subr.bf16.mxu0 %v6339_v28  ;;  %v6396_v27 = vld [vmem:[#allocation5 + $0xdbc] ss:$60 sps:$4 sm:$0xff]  }
 0x1b3   : > { %v3574_v37 = vpop.f32.mrf.mxu1  ;;  %3868 = vmatprep.subr.bf16.mxu1 %v6342_v29  ;;  %v3573_v40 = vadd.f32 %v3572_v32, %v3532_v35  ;;  %v3534_v41 = vadd.f32 %v3533_v36, %v983_v30  ;;  %3857 = vmatprep.mubr.bf16.mxu0 %v7330_v47  ;;  %v6391_v28 = vld [vmem:[#allocation5 + $0x638] ss:$60 sps:$4 sm:$0xff]   ;;  %v6399_v30 = vld [vmem:[#allocation5 + $0x5c4] ss:$60 sps:$4 sm:$0xff]   ;;  %v6408_v35 = vld [vmem:[#allocation5 + $0xccc] ss:$60 sps:$4 sm:$0xff]  }
 0x1b4   : > { %3898 = vmatprep.mubr.bf16.mxu1 %v7333_v51  ;;  %v3535_v44 = vpop.f32.mrf.mxu0  ;;  %v6394_v29 = vld [vmem:[#allocation5 + $0xdb8] ss:$60 sps:$4 sm:$0xff]   ;;  %v6397_v32 = vld [vmem:[#allocation5 + $0x5c0] ss:$60 sps:$4 sm:$0xff]   ;;  %v6403_v36 = vld [vmem:[#allocation5 + $0x548] ss:$60 sps:$4 sm:$0xff]  }
 0x1b5   : > { %v3576_v45 = vpop.f32.mrf.mxu1  ;;  %v4151_v46 = vmax.f32 %v3573_v40, 0.0  ;;  %v3575_v48 = vadd.f32 %v3574_v37, %v3534_v41  ;;  %3828 = vmatpush1.bf16.msra.mxu0 %v6337_v33  ;;  %v6400_v33 = vld [vmem:[#allocation5 + $0xd40] ss:$60 sps:$4 sm:$0xff]   ;;  %v6406_v37 = vld [vmem:[#allocation5 + $0xcc8] ss:$60 sps:$4 sm:$0xff]  }
 0x1b6   : > { %3869 = vmatpush1.bf16.msra.mxu1 %v6340_v34  ;;  %v3536_v49 = vpop.f32.mrf.mxu0  ;;  %3829 = vmatprep.subr.bf16.mxu0 %v6345_v38  ;;  %v6405_v34 = vld [vmem:[#allocation5 + $0x54c] ss:$60 sps:$4 sm:$0xff]   ;;  %v6411_v38 = vld [vmem:[#allocation5 + $0x4d4] ss:$60 sps:$4 sm:$0xff]  }
 0x1b7   : > { %v3577_v50 = vpop.f32.mrf.mxu1  ;;  %3870 = vmatprep.subr.bf16.mxu1 %v6348_v39  ;;  %v4152_v54 = vmax.f32 %v3575_v48, 0.0  ;;  %v6414_v39 = vld [vmem:[#allocation5 + $0xc54] ss:$60 sps:$4 sm:$0xff]   ;;  %v6426_v48 = vld [vmem:[#allocation5 + $0xb64] ss:$60 sps:$4 sm:$0xff]  }
 0x1b8   : > { %v6409_v40 = vld [vmem:[#allocation5 + $0x4d0] ss:$60 sps:$4 sm:$0xff]   ;;  %v6415_v44 = vld [vmem:[#allocation5 + $0x458] ss:$60 sps:$4 sm:$0xff]   ;;  %v6421_v49 = vld [vmem:[#allocation5 + $0x3e0] ss:$60 sps:$4 sm:$0xff]  }
 0x1b9   : > { %v7371_v55 = vmax.f32 %v4151_v46, %v4152_v54  ;;  %3830 = vmatpush1.bf16.msra.mxu0 %v6343_v42  ;;  %v6412_v41 = vld [vmem:[#allocation5 + $0xc50] ss:$60 sps:$4 sm:$0xff]   ;;  %v6417_v42 = vld [vmem:[#allocation5 + $0x45c] ss:$60 sps:$4 sm:$0xff]   ;;  %v6423_v46 = vld [vmem:[#allocation5 + $0x3e4] ss:$60 sps:$4 sm:$0xff]  }
 0x1ba   : > { %3871 = vmatpush1.bf16.msra.mxu1 %v6346_v43  ;;  %3831 = vmatprep.subr.bf16.mxu0 %v6351_v52  ;;  %v6420_v43 = vld [vmem:[#allocation5 + $0xbdc] ss:$60 sps:$4 sm:$0xff]   ;;  %v6429_v52 = vld [vmem:[#allocation5 + $0x374] ss:$60 sps:$4 sm:$0xff]  }
 0x1bb   : > { %3872 = vmatprep.subr.bf16.mxu1 %v6354_v53  ;;  %v6418_v45 = vld [vmem:[#allocation5 + $0xbd8] ss:$60 sps:$4 sm:$0xff]   ;;  %v6424_v50 = vld [vmem:[#allocation5 + $0xb60] ss:$60 sps:$4 sm:$0xff]   ;;  %v6427_v54 = vld [vmem:[#allocation5 + $0x370] ss:$60 sps:$4 sm:$0xff]  }
 0x1bc   : > { %v6432_v53 = vld [vmem:[#allocation5 + $0xaf4] ss:$60 sps:$4 sm:$0xff]  }
 0x1bd   : > { %3832 = vmatpush1.bf16.msra.mxu0 %v6349_v56  ;;  %v6430_v56 = vld [vmem:[#allocation5 + $0xaf0] ss:$60 sps:$4 sm:$0xff]  }
 0x1be   : > { %3873 = vmatpush1.bf16.msra.mxu1 %v6352_v57  ;;  %3833 = vmatprep.subr.bf16.mxu0 %v6357_v58  ;;  %v987_v57 = vrot.slane %v7355_v20, %v7374_v19  ;;  %v6435_v58 = vld [vmem:[#allocation5 + $0x2fc] ss:$60 sps:$4 sm:$0xff]  }
 0x1bf   : > { %3874 = vmatprep.subr.bf16.mxu1 %v6360_v59  ;;  %v6438_v59 = vld [vmem:[#allocation5 + $0xa7c] ss:$60 sps:$4 sm:$0xff]  }
 0x1c1   : > { %3834 = vmatpush1.bf16.msra.mxu0 %v6355_v60  ;;  %v991_v60 = vrot.slane %v7355_v20, %v7377_v22  ;;  %v6439_v20 = vld [vmem:[#allocation5 + $0x280] ss:$60 sps:$4 sm:$0xff]  }
 0x1c2   : > { %3875 = vmatpush1.bf16.msra.mxu1 %v6358_v61  ;;  %3835 = vmatprep.subr.bf16.mxu0 %v6363_v62  ;;  %v6433_v61 = vld [vmem:[#allocation5 + $0x2f8] ss:$60 sps:$4 sm:$0xff]  }
 0x1c3   : > { %3876 = vmatprep.subr.bf16.mxu1 %v6366_v63  ;;  %v6436_v62 = vld [vmem:[#allocation5 + $0xa78] ss:$60 sps:$4 sm:$0xff]  }
 0x1c5   : > { %3836 = vmatpush1.bf16.msra.mxu0 %v6361_v0 }
 0x1c6   : > { %3877 = vmatpush1.bf16.msra.mxu1 %v6364_v1  ;;  %3837 = vmatprep.subr.bf16.mxu0 %v6369_v2 }
 0x1c7   : > { %3878 = vmatprep.subr.bf16.mxu1 %v6372_v3 }
 0x1c9   : > { %3838 = vmatpush1.bf16.msra.mxu0 %v6367_v4  ;;  %v6441_v4 = vld [vmem:[#allocation5 + $0x284] ss:$60 sps:$4 sm:$0xff]  }
 0x1ca   : > { %3879 = vmatpush1.bf16.msra.mxu1 %v6370_v5  ;;  %3839 = vmatprep.subr.bf16.mxu0 %v6375_v8  ;;  %v6444_v5 = vld [vmem:[#allocation5 + $0xa04] ss:$60 sps:$4 sm:$0xff]  }
 0x1cb   : > { %3880 = vmatprep.subr.bf16.mxu1 %v6378_v9 }
 0x1cd   : > { %3840 = vmatpush1.bf16.msra.mxu0 %v6373_v10  ;;  %v6442_v10 = vld [vmem:[#allocation5 + $0xa00] ss:$60 sps:$4 sm:$0xff]  }
 0x1ce   : > { %3881 = vmatpush1.bf16.msra.mxu1 %v6376_v11  ;;  %3841 = vmatprep.subr.bf16.mxu0 %v6381_v12 }
 0x1cf   : > { %3882 = vmatprep.subr.bf16.mxu1 %v6384_v13 }
 0x1d1   : > { %3842 = vmatpush2.bf16.msra.mxu0 %v6379_v14 }
 0x1d2   : > { %3883 = vmatpush2.bf16.msra.mxu1 %v6382_v15  ;;  %3843 = vmatprep.subr.bf16.mxu0 %v6387_v17 }
 0x1d3   : > { %3884 = vmatprep.subr.bf16.mxu1 %v6390_v18  ;;  %v6447_v18 = vld [vmem:[#allocation5 + $0x20c] ss:$60 sps:$4 sm:$0xff]  }
 0x1d5   : > { %3844 = vmatpush2.bf16.msra.mxu0 %v6385_v23  ;;  %v6450_v23 = vld [vmem:[#allocation5 + $0x98c] ss:$60 sps:$4 sm:$0xff]  }
 0x1d6   : > { %3885 = vmatpush2.bf16.msra.mxu1 %v6388_v25  ;;  %3845 = vmatprep.subr.bf16.mxu0 %v6393_v26 }
 0x1d7   : > { %3886 = vmatprep.subr.bf16.mxu1 %v6396_v27  ;;  %v6445_v27 = vld [vmem:[#allocation5 + $0x208] ss:$60 sps:$4 sm:$0xff]  }
 0x1d9   : > { %3846 = vmatpush2.bf16.msra.mxu0 %v6391_v28 }
 0x1da   : > { %3887 = vmatpush2.bf16.msra.mxu1 %v6394_v29  ;;  %3847 = vmatprep.subr.bf16.mxu0 %v6399_v30  ;;  %v6448_v29 = vld [vmem:[#allocation5 + $0x988] ss:$60 sps:$4 sm:$0xff]   ;;  %v6453_v30 = vld [vmem:[#allocation5 + $0x194] ss:$60 sps:$4 sm:$0xff]  }
 0x1db   : > { %3888 = vmatprep.subr.bf16.mxu1 %v6402_v31  ;;  %v6456_v31 = vld [vmem:[#allocation5 + $0x914] ss:$60 sps:$4 sm:$0xff]  }
 0x1dd   : > { %3848 = vmatpush2.bf16.msra.mxu0 %v6397_v32  ;;  %v6451_v32 = vld [vmem:[#allocation5 + $0x190] ss:$60 sps:$4 sm:$0xff]  }
 0x1de   : > { %3889 = vmatpush2.bf16.msra.mxu1 %v6400_v33  ;;  %3849 = vmatprep.subr.bf16.mxu0 %v6405_v34  ;;  %v6454_v33 = vld [vmem:[#allocation5 + $0x910] ss:$60 sps:$4 sm:$0xff]   ;;  %v6459_v34 = vld [vmem:[#allocation5 + $0x11c] ss:$60 sps:$4 sm:$0xff]  }
 0x1df   : > { %3890 = vmatprep.subr.bf16.mxu1 %v6408_v35  ;;  %v6462_v35 = vld [vmem:[#allocation5 + $0x89c] ss:$60 sps:$4 sm:$0xff]  }
 0x1e1   : > { %3850 = vmatpush2.bf16.msra.mxu0 %v6403_v36  ;;  %v6460_v36 = vld [vmem:[#allocation5 + $0x898] ss:$60 sps:$4 sm:$0xff]  }
 0x1e2   : > { %3891 = vmatpush2.bf16.msra.mxu1 %v6406_v37  ;;  %3851 = vmatprep.subr.bf16.mxu0 %v6411_v38  ;;  %v6465_v37 = vld [vmem:[#allocation5 + $0xa4] ss:$60 sps:$4 sm:$0xff]  }
 0x1e3   : > { %3892 = vmatprep.subr.bf16.mxu1 %v6414_v39  ;;  %v6468_v38 = vld [vmem:[#allocation5 + $0x824] ss:$60 sps:$4 sm:$0xff]  }
 0x1e4   : > { %v6463_v39 = vld [vmem:[#allocation5 + $0xa0] ss:$60 sps:$4 sm:$0xff]  }
 0x1e5   : > { %3852 = vmatpush2.bf16.msra.mxu0 %v6409_v40  ;;  %v6466_v40 = vld [vmem:[#allocation5 + $0x820] ss:$60 sps:$4 sm:$0xff]  }
 0x1e6   : > { %3893 = vmatpush2.bf16.msra.mxu1 %v6412_v41  ;;  %3853 = vmatprep.subr.bf16.mxu0 %v6417_v42  ;;  %v6471_v41 = vld [vmem:[#allocation5 + $0x2c] ss:$60 sps:$4 sm:$0xff]  }
 0x1e7   : > { %3894 = vmatprep.subr.bf16.mxu1 %v6420_v43  ;;  %v6474_v42 = vld [vmem:[#allocation5 + $0x7ac] ss:$60 sps:$4 sm:$0xff]  }
 0x1e8   : > { %v6469_v43 = vld [vmem:[#allocation5 + $0x28] ss:$60 sps:$4 sm:$0xff]  }
 0x1e9   : > { %3854 = vmatpush2.bf16.msra.mxu0 %v6415_v44  ;;  %v6472_v44 = vld [vmem:[#allocation5 + $0x7a8] ss:$60 sps:$4 sm:$0xff]  }
 0x1ea   : > { %3895 = vmatpush2.bf16.msra.mxu1 %v6418_v45  ;;  %3855 = vmatprep.subr.bf16.mxu0 %v6423_v46  ;;  %v6477_v45 = vld [vmem:[#allocation5 + $0x734] ss:$60 sps:$4 sm:$0xff]  }
 0x1eb   : > { %3896 = vmatprep.subr.bf16.mxu1 %v6426_v48  ;;  %v6480_v46 = vld [vmem:[#allocation5 + $0xeb4] ss:$60 sps:$4 sm:$0xff]  }
 0x1ec   : > { %v6475_v48 = vld [vmem:[#allocation5 + $0x730] ss:$60 sps:$4 sm:$0xff]  }
 0x1ed   : > { %3856 = vmatpush2.bf16.msra.mxu0 %v6421_v49  ;;  %v6478_v49 = vld [vmem:[#allocation5 + $0xeb0] ss:$60 sps:$4 sm:$0xff]  }
 0x1ee   : > { %3897 = vmatpush2.bf16.msra.mxu1 %v6424_v50  ;;  %3907 = vmatprep.subr.bf16.mxu0 %v6429_v52  ;;  %v6483_v50 = vld [vmem:[#allocation5 + $0x6bc] ss:$60 sps:$4 sm:$0xff]  }
 0x1ef   : > { %3948 = vmatprep.subr.bf16.mxu1 %v6432_v53  ;;  %v6486_v52 = vld [vmem:[#allocation5 + $0xe3c] ss:$60 sps:$4 sm:$0xff]  }
 0x1f0   : > { %v3613_v63 = vpop.f32.mrf.mxu0  ;;  %3858 = vmatmul.mubr.bf16.vlgmr.msra.gmra.mxu0 %v7337_v6  ;;  %v6481_v53 = vld [vmem:[#allocation5 + $0x6b8] ss:$60 sps:$4 sm:$0xff]  }
 0x1f1   : > { %v3654_v0 = vpop.f32.mrf.mxu1  ;;  %3899 = vmatmul.mubr.bf16.vlgmr.msra.gmra.mxu1 %v7339_v7  ;;  %v3614_v1 = vadd.f32 %v3613_v63, %v987_v57  ;;  %3908 = vmatpush1.bf16.msra.mxu0 %v6427_v54  ;;  %v6484_v54 = vld [vmem:[#allocation5 + $0xe38] ss:$60 sps:$4 sm:$0xff]   ;;  %v6492_v57 = vld [vmem:[#allocation5 + $0xdc4] ss:$60 sps:$4 sm:$0xff]  }
 0x1f2   : > { %3949 = vmatpush1.bf16.msra.mxu1 %v6430_v56  ;;  %v3615_v2 = vpop.f32.mrf.mxu0  ;;  %3909 = vmatprep.subr.bf16.mxu0 %v6435_v58  ;;  %v6489_v56 = vld [vmem:[#allocation5 + $0x644] ss:$60 sps:$4 sm:$0xff]  }
 0x1f3   : > { %v3656_v3 = vpop.f32.mrf.mxu1  ;;  %3950 = vmatprep.subr.bf16.mxu1 %v6438_v59  ;;  %v3655_v8 = vadd.f32 %v3654_v0, %v3614_v1  ;;  %v3616_v9 = vadd.f32 %v3615_v2, %v991_v60  ;;  %3939 = vmatprep.mubr.bf16.mxu0 %v7330_v47  ;;  %v6487_v58 = vld [vmem:[#allocation5 + $0x640] ss:$60 sps:$4 sm:$0xff]   ;;  %v6495_v60 = vld [vmem:[#allocation5 + $0x5cc] ss:$60 sps:$4 sm:$0xff]   ;;  %v6501_v0 = vld [vmem:[#allocation5 + $0x554] ss:$60 sps:$4 sm:$0xff]  }
 0x1f4   : > { %3980 = vmatprep.mubr.bf16.mxu1 %v7333_v51  ;;  %v3617_v11 = vpop.f32.mrf.mxu0  ;;  %v6490_v59 = vld [vmem:[#allocation5 + $0xdc0] ss:$60 sps:$4 sm:$0xff]   ;;  %v6496_v63 = vld [vmem:[#allocation5 + $0xd48] ss:$60 sps:$4 sm:$0xff]   ;;  %v6504_v1 = vld [vmem:[#allocation5 + $0xcd4] ss:$60 sps:$4 sm:$0xff]  }
 0x1f5   : > { %v3658_v12 = vpop.f32.mrf.mxu1  ;;  %v4153_v13 = vmax.f32 %v3655_v8, 0.0  ;;  %v3657_v14 = vadd.f32 %v3656_v3, %v3616_v9  ;;  %3910 = vmatpush1.bf16.msra.mxu0 %v6433_v61  ;;  %v6498_v61 = vld [vmem:[#allocation5 + $0xd4c] ss:$60 sps:$4 sm:$0xff]   ;;  %v6505_v8 = vld [vmem:[#allocation5 + $0x4d8] ss:$60 sps:$4 sm:$0xff]  }
 0x1f6   : > { %3951 = vmatpush1.bf16.msra.mxu1 %v6436_v62  ;;  %v3618_v15 = vpop.f32.mrf.mxu0  ;;  %3911 = vmatprep.subr.bf16.mxu0 %v6441_v4  ;;  %v6493_v62 = vld [vmem:[#allocation5 + $0x5c8] ss:$60 sps:$4 sm:$0xff]   ;;  %v6499_v2 = vld [vmem:[#allocation5 + $0x550] ss:$60 sps:$4 sm:$0xff]   ;;  %v6507_v4 = vld [vmem:[#allocation5 + $0x4dc] ss:$60 sps:$4 sm:$0xff]  }
 0x1f7   : > { %v3659_v17 = vpop.f32.mrf.mxu1  ;;  %3952 = vmatprep.subr.bf16.mxu1 %v6444_v5  ;;  %v4167_v25 = vmax.f32 %v7371_v55, %v4153_v13  ;;  %v4154_v26 = vmax.f32 %v3657_v14, 0.0  ;;  %v6457_v55 = vld [vmem:[#allocation5 + $0x118] ss:$60 sps:$4 sm:$0xff]   ;;  %v6502_v3 = vld [vmem:[#allocation5 + $0xcd0] ss:$60 sps:$4 sm:$0xff]  }
 0x1f8   : > { %v6510_v5 = vld [vmem:[#allocation5 + $0xc5c] ss:$60 sps:$4 sm:$0xff]   ;;  %v6519_v13 = vld [vmem:[#allocation5 + $0x3ec] ss:$60 sps:$4 sm:$0xff]  }
 0x1f9   : > { %v7388_v28 = vmax.f32 %v4167_v25, %v4154_v26  ;;  %3912 = vmatpush1.bf16.msra.mxu0 %v6439_v20  ;;  %v6508_v9 = vld [vmem:[#allocation5 + $0xc58] ss:$60 sps:$4 sm:$0xff]   ;;  %v6513_v20 = vld [vmem:[#allocation5 + $0x464] ss:$60 sps:$4 sm:$0xff]   ;;  %v6522_v14 = vld [vmem:[#allocation5 + $0xb6c] ss:$60 sps:$4 sm:$0xff]  }
 0x1fa   : > { %3953 = vmatpush1.bf16.msra.mxu1 %v6442_v10  ;;  %3913 = vmatprep.subr.bf16.mxu0 %v6447_v18  ;;  %v6516_v10 = vld [vmem:[#allocation5 + $0xbe4] ss:$60 sps:$4 sm:$0xff]   ;;  %v994_v18 = vsub.s32 4, %v7353_v16  ;;  %v6528_v25 = vld [vmem:[#allocation5 + $0xafc] ss:$60 sps:$4 sm:$0xff]   ;;  %v998_v26 = vsub.s32 5, %v7353_v16 }
 0x1fb   : > { %3954 = vmatprep.subr.bf16.mxu1 %v6450_v23  ;;  %v6511_v11 = vld [vmem:[#allocation5 + $0x460] ss:$60 sps:$4 sm:$0xff]   ;;  %v6517_v15 = vld [vmem:[#allocation5 + $0x3e8] ss:$60 sps:$4 sm:$0xff]  }
 0x1fc   : > { %v6514_v12 = vld [vmem:[#allocation5 + $0xbe0] ss:$60 sps:$4 sm:$0xff]   ;;  %v6520_v17 = vld [vmem:[#allocation5 + $0xb68] ss:$60 sps:$4 sm:$0xff]  }
 0x1fd   : > { %3914 = vmatpush1.bf16.msra.mxu0 %v6445_v27  ;;  %v6525_v23 = vld [vmem:[#allocation5 + $0x37c] ss:$60 sps:$4 sm:$0xff]   ;;  %v7392_v27 = vld [vmem:[#allocation7] sm:$0xff] }
 0x1fe   : > { %3955 = vmatpush1.bf16.msra.mxu1 %v6448_v29  ;;  %3915 = vmatprep.subr.bf16.mxu0 %v6453_v30  ;;  %v995_v29 = vrot.slane %v7392_v27, %v994_v18  ;;  %v6523_v30 = vld [vmem:[#allocation5 + $0x378] ss:$60 sps:$4 sm:$0xff]  }
 0x1ff   : > { %3956 = vmatprep.subr.bf16.mxu1 %v6456_v31  ;;  %v6526_v31 = vld [vmem:[#allocation5 + $0xaf8] ss:$60 sps:$4 sm:$0xff]  }
 0x201   : > { %3916 = vmatpush1.bf16.msra.mxu0 %v6451_v32  ;;  %v6531_v32 = vld [vmem:[#allocation5 + $0x304] ss:$60 sps:$4 sm:$0xff]  }
 0x202   : > { %3957 = vmatpush1.bf16.msra.mxu1 %v6454_v33  ;;  %3917 = vmatprep.subr.bf16.mxu0 %v6459_v34  ;;  %v6534_v33 = vld [vmem:[#allocation5 + $0xa84] ss:$60 sps:$4 sm:$0xff]   ;;  %v999_v34 = vrot.slane %v7392_v27, %v998_v26 }
 0x203   : > { %3958 = vmatprep.subr.bf16.mxu1 %v6462_v35 }
 0x205   : > { %3918 = vmatpush1.bf16.msra.mxu0 %v6457_v55 }
 0x206   : > { %3959 = vmatpush1.bf16.msra.mxu1 %v6460_v36  ;;  %3919 = vmatprep.subr.bf16.mxu0 %v6465_v37  ;;  %v6529_v37 = vld [vmem:[#allocation5 + $0x300] ss:$60 sps:$4 sm:$0xff]  }
 0x207   : > { %3960 = vmatprep.subr.bf16.mxu1 %v6468_v38  ;;  %v6532_v38 = vld [vmem:[#allocation5 + $0xa80] ss:$60 sps:$4 sm:$0xff]  }
 0x209   : > { %3920 = vmatpush1.bf16.msra.mxu0 %v6463_v39 }
 0x20a   : > { %3961 = vmatpush1.bf16.msra.mxu1 %v6466_v40  ;;  %3921 = vmatprep.subr.bf16.mxu0 %v6471_v41  ;;  %v6537_v41 = vld [vmem:[#allocation5 + $0x28c] ss:$60 sps:$4 sm:$0xff]  }
 0x20b   : > { %3962 = vmatprep.subr.bf16.mxu1 %v6474_v42  ;;  %v6540_v42 = vld [vmem:[#allocation5 + $0xa0c] ss:$60 sps:$4 sm:$0xff]  }
 0x20d   : > { %3922 = vmatpush1.bf16.msra.mxu0 %v6469_v43 }
 0x20e   : > { %3963 = vmatpush1.bf16.msra.mxu1 %v6472_v44  ;;  %3923 = vmatprep.subr.bf16.mxu0 %v6477_v45 }
 0x20f   : > { %3964 = vmatprep.subr.bf16.mxu1 %v6480_v46 }
 0x211   : > { %3924 = vmatpush2.bf16.msra.mxu0 %v6475_v48 }
 0x212   : > { %3965 = vmatpush2.bf16.msra.mxu1 %v6478_v49  ;;  %3925 = vmatprep.subr.bf16.mxu0 %v6483_v50  ;;  %v6535_v50 = vld [vmem:[#allocation5 + $0x288] ss:$60 sps:$4 sm:$0xff]  }
 0x213   : > { %3966 = vmatprep.subr.bf16.mxu1 %v6486_v52  ;;  %v6538_v52 = vld [vmem:[#allocation5 + $0xa08] ss:$60 sps:$4 sm:$0xff]  }
 0x215   : > { %3926 = vmatpush2.bf16.msra.mxu0 %v6481_v53 }
 0x216   : > { %3967 = vmatpush2.bf16.msra.mxu1 %v6484_v54  ;;  %3927 = vmatprep.subr.bf16.mxu0 %v6489_v56  ;;  %v6543_v56 = vld [vmem:[#allocation5 + $0x214] ss:$60 sps:$4 sm:$0xff]  }
 0x217   : > { %3968 = vmatprep.subr.bf16.mxu1 %v6492_v57  ;;  %v6546_v57 = vld [vmem:[#allocation5 + $0x994] ss:$60 sps:$4 sm:$0xff]  }
 0x219   : > { %3928 = vmatpush2.bf16.msra.mxu0 %v6487_v58 }
 0x21a   : > { %3969 = vmatpush2.bf16.msra.mxu1 %v6490_v59  ;;  %3929 = vmatprep.subr.bf16.mxu0 %v6495_v60 }
 0x21b   : > { %3970 = vmatprep.subr.bf16.mxu1 %v6498_v61  ;;  %v6541_v61 = vld [vmem:[#allocation5 + $0x210] ss:$60 sps:$4 sm:$0xff]  }
 0x21d   : > { %3930 = vmatpush2.bf16.msra.mxu0 %v6493_v62  ;;  %v6544_v62 = vld [vmem:[#allocation5 + $0x990] ss:$60 sps:$4 sm:$0xff]  }
 0x21e   : > { %3971 = vmatpush2.bf16.msra.mxu1 %v6496_v63  ;;  %3931 = vmatprep.subr.bf16.mxu0 %v6501_v0  ;;  %v6549_v63 = vld [vmem:[#allocation5 + $0x19c] ss:$60 sps:$4 sm:$0xff]  }
 0x21f   : > { %3972 = vmatprep.subr.bf16.mxu1 %v6504_v1  ;;  %v6552_v0 = vld [vmem:[#allocation5 + $0x91c] ss:$60 sps:$4 sm:$0xff]  }
 0x220   : > { %v6547_v1 = vld [vmem:[#allocation5 + $0x198] ss:$60 sps:$4 sm:$0xff]  }
 0x221   : > { %3932 = vmatpush2.bf16.msra.mxu0 %v6499_v2  ;;  %v6550_v2 = vld [vmem:[#allocation5 + $0x918] ss:$60 sps:$4 sm:$0xff]  }
 0x222   : > { %3973 = vmatpush2.bf16.msra.mxu1 %v6502_v3  ;;  %3933 = vmatprep.subr.bf16.mxu0 %v6507_v4  ;;  %v6555_v3 = vld [vmem:[#allocation5 + $0x124] ss:$60 sps:$4 sm:$0xff]  }
 0x223   : > { %3974 = vmatprep.subr.bf16.mxu1 %v6510_v5  ;;  %v6558_v4 = vld [vmem:[#allocation5 + $0x8a4] ss:$60 sps:$4 sm:$0xff]  }
 0x224   : > { %v6556_v5 = vld [vmem:[#allocation5 + $0x8a0] ss:$60 sps:$4 sm:$0xff]  }
 0x225   : > { %3934 = vmatpush2.bf16.msra.mxu0 %v6505_v8  ;;  %v6561_v8 = vld [vmem:[#allocation5 + $0xac] ss:$60 sps:$4 sm:$0xff]  }
 0x226   : > { %3975 = vmatpush2.bf16.msra.mxu1 %v6508_v9  ;;  %3935 = vmatprep.subr.bf16.mxu0 %v6513_v20  ;;  %v6564_v9 = vld [vmem:[#allocation5 + $0x82c] ss:$60 sps:$4 sm:$0xff]  }
 0x227   : > { %3976 = vmatprep.subr.bf16.mxu1 %v6516_v10  ;;  %v6559_v20 = vld [vmem:[#allocation5 + $0xa8] ss:$60 sps:$4 sm:$0xff]  }
 0x228   : > { %v6562_v10 = vld [vmem:[#allocation5 + $0x828] ss:$60 sps:$4 sm:$0xff]  }
 0x229   : > { %3936 = vmatpush2.bf16.msra.mxu0 %v6511_v11  ;;  %v6567_v11 = vld [vmem:[#allocation5 + $0x34] ss:$60 sps:$4 sm:$0xff]  }
 0x22a   : > { %3977 = vmatpush2.bf16.msra.mxu1 %v6514_v12  ;;  %3937 = vmatprep.subr.bf16.mxu0 %v6519_v13  ;;  %v6570_v12 = vld [vmem:[#allocation5 + $0x7b4] ss:$60 sps:$4 sm:$0xff]  }
 0x22b   : > { %3978 = vmatprep.subr.bf16.mxu1 %v6522_v14  ;;  %v6565_v13 = vld [vmem:[#allocation5 + $0x30] ss:$60 sps:$4 sm:$0xff]  }
 0x22c   : > { %v6568_v14 = vld [vmem:[#allocation5 + $0x7b0] ss:$60 sps:$4 sm:$0xff]  }
 0x22d   : > { %3938 = vmatpush2.bf16.msra.mxu0 %v6517_v15  ;;  %v6573_v15 = vld [vmem:[#allocation5 + $0x73c] ss:$60 sps:$4 sm:$0xff]  }
 0x22e   : > { %3979 = vmatpush2.bf16.msra.mxu1 %v6520_v17  ;;  %3989 = vmatprep.subr.bf16.mxu0 %v6525_v23  ;;  %v6576_v17 = vld [vmem:[#allocation5 + $0xebc] ss:$60 sps:$4 sm:$0xff]  }
 0x22f   : > { %4030 = vmatprep.subr.bf16.mxu1 %v6528_v25  ;;  %v6571_v23 = vld [vmem:[#allocation5 + $0x738] ss:$60 sps:$4 sm:$0xff]  }
 0x230   : > { %v3695_v35 = vpop.f32.mrf.mxu0  ;;  %3940 = vmatmul.mubr.bf16.vlgmr.msra.gmra.mxu0 %v7337_v6  ;;  %v6574_v25 = vld [vmem:[#allocation5 + $0xeb8] ss:$60 sps:$4 sm:$0xff]  }
 0x231   : > { %v3736_v55 = vpop.f32.mrf.mxu1  ;;  %3981 = vmatmul.mubr.bf16.vlgmr.msra.gmra.mxu1 %v7339_v7  ;;  %v3696_v36 = vadd.f32 %v3695_v35, %v995_v29  ;;  %3990 = vmatpush1.bf16.msra.mxu0 %v6523_v30  ;;  %v6579_v29 = vld [vmem:[#allocation5 + $0x6c4] ss:$60 sps:$4 sm:$0xff]  }
 0x232   : > { %4031 = vmatpush1.bf16.msra.mxu1 %v6526_v31  ;;  %v3697_v39 = vpop.f32.mrf.mxu0  ;;  %3991 = vmatprep.subr.bf16.mxu0 %v6531_v32  ;;  %v6582_v30 = vld [vmem:[#allocation5 + $0xe44] ss:$60 sps:$4 sm:$0xff]  }
 0x233   : > { %v3738_v40 = vpop.f32.mrf.mxu1  ;;  %4032 = vmatprep.subr.bf16.mxu1 %v6534_v33  ;;  %v3737_v43 = vadd.f32 %v3736_v55, %v3696_v36  ;;  %v3698_v44 = vadd.f32 %v3697_v39, %v999_v34  ;;  %4021 = vmatprep.mubr.bf16.mxu0 %v7330_v47  ;;  %v6577_v31 = vld [vmem:[#allocation5 + $0x6c0] ss:$60 sps:$4 sm:$0xff]   ;;  %v6585_v33 = vld [vmem:[#allocation5 + $0x64c] ss:$60 sps:$4 sm:$0xff]   ;;  %v6591_v36 = vld [vmem:[#allocation5 + $0x5d4] ss:$60 sps:$4 sm:$0xff]  }
 0x234   : > { %4062 = vmatprep.mubr.bf16.mxu1 %v7333_v51  ;;  %v3699_v45 = vpop.f32.mrf.mxu0  ;;  %v6580_v32 = vld [vmem:[#allocation5 + $0xe40] ss:$60 sps:$4 sm:$0xff]   ;;  %v6588_v34 = vld [vmem:[#allocation5 + $0xdcc] ss:$60 sps:$4 sm:$0xff]  }
 0x235   : > { %v3740_v46 = vpop.f32.mrf.mxu1  ;;  %v4155_v48 = vmax.f32 %v3737_v43, 0.0  ;;  %v3739_v49 = vadd.f32 %v3738_v40, %v3698_v44  ;;  %3992 = vmatpush1.bf16.msra.mxu0 %v6529_v37  ;;  %v6583_v35 = vld [vmem:[#allocation5 + $0x648] ss:$60 sps:$4 sm:$0xff]   ;;  %v6594_v37 = vld [vmem:[#allocation5 + $0xd54] ss:$60 sps:$4 sm:$0xff]  }
 0x236   : > { %4033 = vmatpush1.bf16.msra.mxu1 %v6532_v38  ;;  %v3700_v53 = vpop.f32.mrf.mxu0  ;;  %3993 = vmatprep.subr.bf16.mxu0 %v6537_v41  ;;  %v6586_v55 = vld [vmem:[#allocation5 + $0xdc8] ss:$60 sps:$4 sm:$0xff]   ;;  %v6589_v38 = vld [vmem:[#allocation5 + $0x5d0] ss:$60 sps:$4 sm:$0xff]   ;;  %v6597_v40 = vld [vmem:[#allocation5 + $0x55c] ss:$60 sps:$4 sm:$0xff]  }
 0x237   : > { %v3741_v54 = vpop.f32.mrf.mxu1  ;;  %4034 = vmatprep.subr.bf16.mxu1 %v6540_v42  ;;  %v4169_v58 = vmax.f32 %v7388_v28, %v4155_v48  ;;  %v4156_v59 = vmax.f32 %v3739_v49, 0.0  ;;  %v6553_v28 = vld [vmem:[#allocation5 + $0x120] ss:$60 sps:$4 sm:$0xff]   ;;  %v6592_v39 = vld [vmem:[#allocation5 + $0xd50] ss:$60 sps:$4 sm:$0xff]  }
 0x238   : > { %v6600_v41 = vld [vmem:[#allocation5 + $0xcdc] ss:$60 sps:$4 sm:$0xff]   ;;  %v6603_v44 = vld [vmem:[#allocation5 + $0x4e4] ss:$60 sps:$4 sm:$0xff]   ;;  %v6609_v49 = vld [vmem:[#allocation5 + $0x46c] ss:$60 sps:$4 sm:$0xff]  }
 0x239   : > { %v7405_v60 = vmax.f32 %v4169_v58, %v4156_v59  ;;  %3994 = vmatpush1.bf16.msra.mxu0 %v6535_v50  ;;  %v6595_v42 = vld [vmem:[#allocation5 + $0x558] ss:$60 sps:$4 sm:$0xff]   ;;  %v6606_v45 = vld [vmem:[#allocation5 + $0xc64] ss:$60 sps:$4 sm:$0xff]   ;;  %v6612_v50 = vld [vmem:[#allocation5 + $0xbec] ss:$60 sps:$4 sm:$0xff]  }
 0x23a   : > { %4035 = vmatpush1.bf16.msra.mxu1 %v6538_v52  ;;  %3995 = vmatprep.subr.bf16.mxu0 %v6543_v56  ;;  %v6598_v43 = vld [vmem:[#allocation5 + $0xcd8] ss:$60 sps:$4 sm:$0xff]   ;;  %v6601_v46 = vld [vmem:[#allocation5 + $0x4e0] ss:$60 sps:$4 sm:$0xff]   ;;  %v6607_v52 = vld [vmem:[#allocation5 + $0x468] ss:$60 sps:$4 sm:$0xff]  }
 0x23b   : > { %4036 = vmatprep.subr.bf16.mxu1 %v6546_v57  ;;  %v6604_v48 = vld [vmem:[#allocation5 + $0xc60] ss:$60 sps:$4 sm:$0xff]   ;;  %v6610_v53 = vld [vmem:[#allocation5 + $0xbe8] ss:$60 sps:$4 sm:$0xff]   ;;  %v6615_v54 = vld [vmem:[#allocation5 + $0x3f4] ss:$60 sps:$4 sm:$0xff]  }
 0x23c   : > { %v6618_v56 = vld [vmem:[#allocation5 + $0xb74] ss:$60 sps:$4 sm:$0xff]   ;;  %v1002_v59 = vsub.s32 6, %v7353_v16 }
 0x23d   : > { %3996 = vmatpush1.bf16.msra.mxu0 %v6541_v61  ;;  %v6613_v57 = vld [vmem:[#allocation5 + $0x3f0] ss:$60 sps:$4 sm:$0xff]   ;;  %v6619_v61 = vld [vmem:[#allocation5 + $0x740] ss:$60 sps:$4 sm:$0xff]  }
 0x23e   : > { %4037 = vmatpush1.bf16.msra.mxu1 %v6544_v62  ;;  %3997 = vmatprep.subr.bf16.mxu0 %v6549_v63  ;;  %v6616_v58 = vld [vmem:[#allocation5 + $0xb70] ss:$60 sps:$4 sm:$0xff]   ;;  %v6620_v62 = vld [vmem:[#allocation5 + $0xec0] ss:$60 sps:$4 sm:$0xff]   ;;  %v1006_v63 = vsub.s32 7, %v7353_v16 }
 0x23f   : > { %4038 = vmatprep.subr.bf16.mxu1 %v6552_v0  ;;  %v1003_v0 = vrot.slane %v7392_v27, %v1002_v59 }
 0x241   : > { %3998 = vmatpush1.bf16.msra.mxu0 %v6547_v1  ;;  %v6621_v1 = vld [vmem:[#allocation5 + $0x380] ss:$60 sps:$4 sm:$0xff]  }
 0x242   : > { %4039 = vmatpush1.bf16.msra.mxu1 %v6550_v2  ;;  %3999 = vmatprep.subr.bf16.mxu0 %v6555_v3  ;;  %v6622_v2 = vld [vmem:[#allocation5 + $0xb00] ss:$60 sps:$4 sm:$0xff]   ;;  %v6623_v3 = vld [vmem:[#allocation5 + $0x6c8] ss:$60 sps:$4 sm:$0xff]  }
 0x243   : > { %4040 = vmatprep.subr.bf16.mxu1 %v6558_v4  ;;  %v6624_v4 = vld [vmem:[#allocation5 + $0xe48] ss:$60 sps:$4 sm:$0xff]  }
 0x245   : > { %4000 = vmatpush1.bf16.msra.mxu0 %v6553_v28  ;;  %v1007_v28 = vrot.slane %v7392_v27, %v1006_v63 }
 0x246   : > { %4041 = vmatpush1.bf16.msra.mxu1 %v6556_v5  ;;  %4001 = vmatprep.subr.bf16.mxu0 %v6561_v8 }
 0x247   : > { %4042 = vmatprep.subr.bf16.mxu1 %v6564_v9 }
 0x249   : > { %4002 = vmatpush1.bf16.msra.mxu0 %v6559_v20  ;;  %v6625_v20 = vld [vmem:[#allocation5 + $0x308] ss:$60 sps:$4 sm:$0xff]  }
 0x24a   : > { %4043 = vmatpush1.bf16.msra.mxu1 %v6562_v10  ;;  %4003 = vmatprep.subr.bf16.mxu0 %v6567_v11  ;;  %v6626_v10 = vld [vmem:[#allocation5 + $0xa88] ss:$60 sps:$4 sm:$0xff]  }
 0x24b   : > { %4044 = vmatprep.subr.bf16.mxu1 %v6570_v12 }
 0x24d   : > { %4004 = vmatpush1.bf16.msra.mxu0 %v6565_v13  ;;  %v6627_v13 = vld [vmem:[#allocation5 + $0x650] ss:$60 sps:$4 sm:$0xff]  }
 0x24e   : > { %4045 = vmatpush1.bf16.msra.mxu1 %v6568_v14  ;;  %4005 = vmatprep.subr.bf16.mxu0 %v6573_v15  ;;  %v6628_v14 = vld [vmem:[#allocation5 + $0xdd0] ss:$60 sps:$4 sm:$0xff]  }
 0x24f   : > { %4046 = vmatprep.subr.bf16.mxu1 %v6576_v17 }
 0x251   : > { %4006 = vmatpush2.bf16.msra.mxu0 %v6571_v23 }
 0x252   : > { %4047 = vmatpush2.bf16.msra.mxu1 %v6574_v25  ;;  %4007 = vmatprep.subr.bf16.mxu0 %v6579_v29 }
 0x253   : > { %4048 = vmatprep.subr.bf16.mxu1 %v6582_v30  ;;  %v6629_v30 = vld [vmem:[#allocation5 + $0x290] ss:$60 sps:$4 sm:$0xff]  }
 0x255   : > { %4008 = vmatpush2.bf16.msra.mxu0 %v6577_v31  ;;  %v6630_v31 = vld [vmem:[#allocation5 + $0xa10] ss:$60 sps:$4 sm:$0xff]  }
 0x256   : > { %4049 = vmatpush2.bf16.msra.mxu1 %v6580_v32  ;;  %4009 = vmatprep.subr.bf16.mxu0 %v6585_v33 }
 0x257   : > { %4050 = vmatprep.subr.bf16.mxu1 %v6588_v34  ;;  %v6631_v34 = vld [vmem:[#allocation5 + $0x5d8] ss:$60 sps:$4 sm:$0xff]  }
 0x259   : > { %4010 = vmatpush2.bf16.msra.mxu0 %v6583_v35  ;;  %v6632_v35 = vld [vmem:[#allocation5 + $0xd58] ss:$60 sps:$4 sm:$0xff]  }
 0x25a   : > { %4051 = vmatpush2.bf16.msra.mxu1 %v6586_v55  ;;  %4011 = vmatprep.subr.bf16.mxu0 %v6591_v36 }
 0x25b   : > { %4052 = vmatprep.subr.bf16.mxu1 %v6594_v37  ;;  %v6634_v37 = vld [vmem:[#allocation5 + $0x998] ss:$60 sps:$4 sm:$0xff]  }
 0x25d   : > { %4012 = vmatpush2.bf16.msra.mxu0 %v6589_v38  ;;  %v6635_v38 = vld [vmem:[#allocation5 + $0x560] ss:$60 sps:$4 sm:$0xff]  }
 0x25e   : > { %4053 = vmatpush2.bf16.msra.mxu1 %v6592_v39  ;;  %4013 = vmatprep.subr.bf16.mxu0 %v6597_v40  ;;  %v6636_v39 = vld [vmem:[#allocation5 + $0xce0] ss:$60 sps:$4 sm:$0xff]  }
 0x25f   : > { %4054 = vmatprep.subr.bf16.mxu1 %v6600_v41  ;;  %v6637_v40 = vld [vmem:[#allocation5 + $0x1a0] ss:$60 sps:$4 sm:$0xff]  }
 0x260   : > { %v6638_v41 = vld [vmem:[#allocation5 + $0x920] ss:$60 sps:$4 sm:$0xff]  }
 0x261   : > { %4014 = vmatpush2.bf16.msra.mxu0 %v6595_v42  ;;  %v6639_v42 = vld [vmem:[#allocation5 + $0x4e8] ss:$60 sps:$4 sm:$0xff]  }
 0x262   : > { %4055 = vmatpush2.bf16.msra.mxu1 %v6598_v43  ;;  %4015 = vmatprep.subr.bf16.mxu0 %v6603_v44  ;;  %v6640_v43 = vld [vmem:[#allocation5 + $0xc68] ss:$60 sps:$4 sm:$0xff]  }
 0x263   : > { %4056 = vmatprep.subr.bf16.mxu1 %v6606_v45  ;;  %v6642_v44 = vld [vmem:[#allocation5 + $0x8a8] ss:$60 sps:$4 sm:$0xff]   ;;  %v6643_v45 = vld [vmem:[#allocation5 + $0x470] ss:$60 sps:$4 sm:$0xff]  }
 0x265   : > { %4016 = vmatpush2.bf16.msra.mxu0 %v6601_v46  ;;  %v6644_v46 = vld [vmem:[#allocation5 + $0xbf0] ss:$60 sps:$4 sm:$0xff]  }
 0x266   : > { %4057 = vmatpush2.bf16.msra.mxu1 %v6604_v48  ;;  %4017 = vmatprep.subr.bf16.mxu0 %v6609_v49  ;;  %v6645_v48 = vld [vmem:[#allocation5 + $0xb0] ss:$60 sps:$4 sm:$0xff]  }
 0x267   : > { %4058 = vmatprep.subr.bf16.mxu1 %v6612_v50  ;;  %v6646_v49 = vld [vmem:[#allocation5 + $0x830] ss:$60 sps:$4 sm:$0xff]   ;;  %v6647_v50 = vld [vmem:[#allocation5 + $0x3f8] ss:$60 sps:$4 sm:$0xff]  }
 0x269   : > { %4018 = vmatpush2.bf16.msra.mxu0 %v6607_v52  ;;  %v6648_v52 = vld [vmem:[#allocation5 + $0xb78] ss:$60 sps:$4 sm:$0xff]  }
 0x26a   : > { %4059 = vmatpush2.bf16.msra.mxu1 %v6610_v53  ;;  %4019 = vmatprep.subr.bf16.mxu0 %v6615_v54  ;;  %v6649_v53 = vld [vmem:[#allocation5 + $0x38] ss:$60 sps:$4 sm:$0xff]  }
 0x26b   : > { %4060 = vmatprep.subr.bf16.mxu1 %v6618_v56  ;;  %v6650_v54 = vld [vmem:[#allocation5 + $0x7b8] ss:$60 sps:$4 sm:$0xff]   ;;  %v7420_v56 = vld [vmem:[#allocation7 + $0x8] sm:$0xff] }
 0x26d   : > { %4020 = vmatpush2.bf16.msra.mxu0 %v6613_v57  ;;  %v1011_v57 = vrot.slane %v7420_v56, %v7358_v21 }
 0x26e   : > { %4061 = vmatpush2.bf16.msra.mxu1 %v6616_v58  ;;  %5690 = vmatprep.subr.bf16.mxu0 %v6619_v61  ;;  %v1015_v58 = vrot.slane %v7420_v56, %v7361_v24 }
 0x26f   : > { %5712 = vmatprep.subr.bf16.mxu1 %v6620_v62 }
 0x270   : > { %v3777_v5 = vpop.f32.mrf.mxu0  ;;  %4022 = vmatmul.mubr.bf16.vlgmr.msra.gmra.mxu0 %v7337_v6 }
 0x271   : > { %v3818_v8 = vpop.f32.mrf.mxu1  ;;  %4063 = vmatmul.mubr.bf16.vlgmr.msra.gmra.mxu1 %v7339_v7  ;;  %v3778_v9 = vadd.f32 %v3777_v5, %v1003_v0  ;;  %5691 = vmatpush3.bf16.msra.mxu0 %v6621_v1 }
 0x272   : > { %5713 = vmatpush3.bf16.msra.mxu1 %v6622_v2  ;;  %v3779_v11 = vpop.f32.mrf.mxu0  ;;  %5692 = vmatprep.subr.bf16.mxu0 %v6623_v3 }
 0x273   : > { %v3820_v12 = vpop.f32.mrf.mxu1  ;;  %5714 = vmatprep.subr.bf16.mxu1 %v6624_v4  ;;  %v3819_v15 = vadd.f32 %v3818_v8, %v3778_v9  ;;  %v3780_v17 = vadd.f32 %v3779_v11, %v1007_v28  ;;  %4103 = vmatprep.mubr.bf16.mxu0 %v7330_v47  ;;  %v6651_v11 = vld [vmem:[#allocation8 + $0xe0] ss:$16 sps:$4 sm:$0xff]  }
 0x274   : > { %4143 = vmatprep.mubr.bf16.mxu1 %v7333_v51  ;;  %v3781_v27 = vpop.f32.mrf.mxu0  ;;  %v6633_v51 = vld [vmem:[#allocation5 + $0x218] ss:$60 sps:$4 sm:$0xff]  }
 0x275   : > { %v3822_v23 = vpop.f32.mrf.mxu1  ;;  %v4157_v25 = vmax.f32 %v3819_v15, 0.0  ;;  %v3821_v29 = vadd.f32 %v3820_v12, %v3780_v17  ;;  %5693 = vmatpush3.bf16.msra.mxu0 %v6625_v20  ;;  %v6653_v12 = vld [vmem:[#allocation8 + $0xe4] ss:$16 sps:$4 sm:$0xff]   ;;  %v6662_v17 = vld [vmem:[#allocation8 + $0xcc] ss:$16 sps:$4 sm:$0xff]  }
 0x276   : > { %5715 = vmatpush3.bf16.msra.mxu1 %v6626_v10  ;;  %v3782_v32 = vpop.f32.mrf.mxu0  ;;  %5694 = vmatprep.subr.bf16.mxu0 %v6627_v13  ;;  %v6654_v13 = vld [vmem:[#allocation8 + $0xe8] ss:$16 sps:$4 sm:$0xff]   ;;  %v6659_v15 = vld [vmem:[#allocation8 + $0xc4] ss:$16 sps:$4 sm:$0xff]   ;;  %v6657_v27 = vld [vmem:[#allocation8 + $0xc0] ss:$16 sps:$4 sm:$0xff]  }
 0x277   : > { %v3823_v33 = vpop.f32.mrf.mxu1  ;;  %5716 = vmatprep.subr.bf16.mxu1 %v6628_v14  ;;  %v4171_v55 = vmax.f32 %v7405_v60, %v4157_v25  ;;  %v4158_v36 = vmax.f32 %v3821_v29, 0.0  ;;  %v6641_v60 = vld [vmem:[#allocation5 + $0x128] ss:$60 sps:$4 sm:$0xff]   ;;  %v6656_v14 = vld [vmem:[#allocation8 + $0xec] ss:$16 sps:$4 sm:$0xff]  }
 0x278   : > { %v6660_v23 = vld [vmem:[#allocation8 + $0xc8] ss:$16 sps:$4 sm:$0xff]   ;;  %v6665_v25 = vld [vmem:[#allocation8 + $0xa4] ss:$16 sps:$4 sm:$0xff]   ;;  %v6668_v29 = vld [vmem:[#allocation8 + $0xac] ss:$16 sps:$4 sm:$0xff]  }
 0x279   : > { %v4172_v47 = vmax.f32 %v4171_v55, %v4158_v36  ;;  %5695 = vmatpush3.bf16.msra.mxu0 %v6629_v30  ;;  %v6663_v30 = vld [vmem:[#allocation8 + $0xa0] ss:$16 sps:$4 sm:$0xff]   ;;  %v6671_v32 = vld [vmem:[#allocation8 + $0x84] ss:$16 sps:$4 sm:$0xff]   ;;  %v6674_v33 = vld [vmem:[#allocation8 + $0x8c] ss:$16 sps:$4 sm:$0xff]  }
 0x27a   : > { %5717 = vmatpush3.bf16.msra.mxu1 %v6630_v31  ;;  %5696 = vmatprep.subr.bf16.mxu0 %v6631_v34  ;;  %v6666_v31 = vld [vmem:[#allocation8 + $0xa8] ss:$16 sps:$4 sm:$0xff]   ;;  %v6669_v34 = vld [vmem:[#allocation8 + $0x80] ss:$16 sps:$4 sm:$0xff]   ;;  %v6677_v55 = vld [vmem:[#allocation8 + $0x64] ss:$16 sps:$4 sm:$0xff]  }
 0x27b   : > { %5718 = vmatprep.subr.bf16.mxu1 %v6632_v35  ;;  %v6672_v35 = vld [vmem:[#allocation8 + $0x88] ss:$16 sps:$4 sm:$0xff]   ;;  %v6680_v36 = vld [vmem:[#allocation8 + $0x6c] ss:$16 sps:$4 sm:$0xff]  }
 0x27d   : > { %5697 = vmatpush3.bf16.msra.mxu0 %v6633_v51  ;;  %v6678_v51 = vld [vmem:[#allocation8 + $0x68] ss:$16 sps:$4 sm:$0xff]  }
 0x27e   : > { %5719 = vmatpush3.bf16.msra.mxu1 %v6634_v37  ;;  %5698 = vmatprep.subr.bf16.mxu0 %v6635_v38  ;;  %v6683_v37 = vld [vmem:[#allocation8 + $0x44] ss:$16 sps:$4 sm:$0xff]   ;;  %v6686_v38 = vld [vmem:[#allocation8 + $0x4c] ss:$16 sps:$4 sm:$0xff]  }
 0x27f   : > { %5720 = vmatprep.subr.bf16.mxu1 %v6636_v39  ;;  %v6681_v39 = vld [vmem:[#allocation8 + $0x40] ss:$16 sps:$4 sm:$0xff]  }
 0x281   : > { %5699 = vmatpush3.bf16.msra.mxu0 %v6637_v40  ;;  %v6684_v40 = vld [vmem:[#allocation8 + $0x48] ss:$16 sps:$4 sm:$0xff]  }
 0x282   : > { %5721 = vmatpush3.bf16.msra.mxu1 %v6638_v41  ;;  %5700 = vmatprep.subr.bf16.mxu0 %v6639_v42  ;;  %v6689_v41 = vld [vmem:[#allocation8 + $0x24] ss:$16 sps:$4 sm:$0xff]   ;;  %v6692_v42 = vld [vmem:[#allocation8 + $0x2c] ss:$16 sps:$4 sm:$0xff]  }
 0x283   : > { %5722 = vmatprep.subr.bf16.mxu1 %v6640_v43  ;;  %v6687_v43 = vld [vmem:[#allocation8 + $0x20] ss:$16 sps:$4 sm:$0xff]  }
 0x285   : > { %5701 = vmatpush3.bf16.msra.mxu0 %v6641_v60  ;;  %v6690_v60 = vld [vmem:[#allocation8 + $0x28] ss:$16 sps:$4 sm:$0xff]  }
 0x286   : > { %5723 = vmatpush3.bf16.msra.mxu1 %v6642_v44  ;;  %5702 = vmatprep.subr.bf16.mxu0 %v6643_v45  ;;  %v6695_v44 = vld [vmem:[#allocation8 + $0x4] ss:$16 sps:$4 sm:$0xff]   ;;  %v6698_v45 = vld [vmem:[#allocation8 + $0xc] ss:$16 sps:$4 sm:$0xff]  }
 0x287   : > { %5724 = vmatprep.subr.bf16.mxu1 %v6644_v46  ;;  %v6693_v46 = vld [vmem:[#allocation8] ss:$16 sps:$4 sm:$0xff]  }
 0x289   : > { %5703 = vmatpush3.bf16.msra.mxu0 %v6645_v48  ;;  %v6696_v48 = vld [vmem:[#allocation8 + $0x8] ss:$16 sps:$4 sm:$0xff]  }
 0x28a   : > { %5725 = vmatpush3.bf16.msra.mxu1 %v6646_v49  ;;  %5704 = vmatprep.subr.bf16.mxu0 %v6647_v50  ;;  %v7073_v49 = vmov 0   ;;  %v6699_v50 = vld [vmem:[#allocation11 + $0x78] sm:$0xff]  }
 0x28b   : > { %5726 = vmatprep.subr.bf16.mxu1 %v6648_v52  ;;  %v6700_v52 = vld [vmem:[#allocation11 + $0xf8] sm:$0xff]  }
 0x28d   : > { %5705 = vmatpush3.bf16.msra.mxu0 %v6649_v53  ;;  %v1019_v53 = vrot.slane %v7420_v56, %v7374_v19 }
 0x28e   : > { %5727 = vmatpush3.bf16.msra.mxu1 %v6650_v54  ;;  %4395 = vmatprep.subr.bf16.mxu0 %v6653_v12  ;;  %v1023_v54 = vrot.slane %v7420_v56, %v7377_v22 }
 0x28f   : > { %4436 = vmatprep.subr.bf16.mxu1 %v6656_v14 }
 0x290   : > { %4104 = vmatmul.mubr.bf16.vlgmr.msra.gmra.mxu0 %v7337_v6 }
 0x291   : > { %4144 = vmatmul.mubr.bf16.vlgmr.msra.gmra.mxu1 %v7339_v7  ;;  %4396 = vmatpush1.bf16.msra.mxu0 %v6651_v11 }
 0x292   : > { %4437 = vmatpush1.bf16.msra.mxu1 %v6654_v13  ;;  %4397 = vmatprep.subr.bf16.mxu0 %v6659_v15 }
 0x293   : > { %4438 = vmatprep.subr.bf16.mxu1 %v6662_v17  ;;  %4427 = vmatprep.mubr.bf16.mxu0 %v7073_v49 }
 0x294   : > { %4468 = vmatprep.mubr.bf16.mxu1 %v7073_v49  ;;  %v6706_v49 = vld [vmem:[#allocation11 + $0xb0] sm:$0xff]  }
 0x295   : > { %4398 = vmatpush1.bf16.msra.mxu0 %v6657_v27 }
 0x296   : > { %4439 = vmatpush1.bf16.msra.mxu1 %v6660_v23  ;;  %4399 = vmatprep.subr.bf16.mxu0 %v6665_v25  ;;  %v1027_v23 = vrot.slane %v7420_v56, %v994_v18 }
 0x297   : > { %4440 = vmatprep.subr.bf16.mxu1 %v6668_v29  ;;  %v1031_v29 = vrot.slane %v7420_v56, %v998_v26 }
 0x299   : > { %4400 = vmatpush1.bf16.msra.mxu0 %v6663_v30 }
 0x29a   : > { %4441 = vmatpush1.bf16.msra.mxu1 %v6666_v31  ;;  %4401 = vmatprep.subr.bf16.mxu0 %v6671_v32 }
 0x29b   : > { %4442 = vmatprep.subr.bf16.mxu1 %v6674_v33 }
 0x29d   : > { %4402 = vmatpush1.bf16.msra.mxu0 %v6669_v34 }
 0x29e   : > { %4443 = vmatpush1.bf16.msra.mxu1 %v6672_v35  ;;  %4403 = vmatprep.subr.bf16.mxu0 %v6677_v55  ;;  %v1035_v35 = vrot.slane %v7420_v56, %v1002_v59  ;;  %v6704_v59 = vld [vmem:[#allocation11 + $0xf0] sm:$0xff]  }
 0x29f   : > { %4444 = vmatprep.subr.bf16.mxu1 %v6680_v36  ;;  %v6705_v56 = vld [vmem:[#allocation11 + $0x30] sm:$0xff]  }
 0x2a2   : > { %4445 = vmatpush1.bf16.msra.mxu1 %v6678_v51 }
 0x2a3   : > { %4446 = vmatprep.subr.bf16.mxu1 %v6686_v38 }
 0x2a6   : > { %4447 = vmatpush1.bf16.msra.mxu1 %v6684_v40 }
 0x2a7   : > { %4448 = vmatprep.subr.bf16.mxu1 %v6692_v42 }
 0x2aa   : > { %4449 = vmatpush1.bf16.msra.mxu1 %v6690_v60 }
 0x2ab   : > { %4450 = vmatprep.subr.bf16.mxu1 %v6698_v45  ;;  %v6701_v45 = vld [vmem:[#allocation11 + $0x38] sm:$0xff]  }
 0x2ae   : > { %4451 = vmatpush1.bf16.msra.mxu1 %v6696_v48  ;;  %v6703_v48 = vld [vmem:[#allocation11 + $0x70] sm:$0xff]  }
 0x2af   : > { %5756 = vmatprep.subr.bf16.mxu1 %v6700_v52  ;;  %v6708_v52 = vld [vmem:[#allocation11 + $0xe8] sm:$0xff]  }
 0x2b0   : > { %v3859_v61 = vpop.f32.mrf.mxu0 }
 0x2b1   : > { %v3900_v62 = vpop.f32.mrf.mxu1  ;;  %v3860_v63 = vadd.f32 %v3859_v61, %v1011_v57 }
 0x2b2   : > { %v3861_v0 = vpop.f32.mrf.mxu0 }
 0x2b3   : > { %v3902_v1 = vpop.f32.mrf.mxu1  ;;  %v3901_v2 = vadd.f32 %v3900_v62, %v3860_v63  ;;  %v3862_v3 = vadd.f32 %v3861_v0, %v1015_v58 }
 0x2b4   : > { %v3863_v4 = vpop.f32.mrf.mxu0 }
 0x2b5   : > { %v3904_v28 = vpop.f32.mrf.mxu1  ;;  %v4159_v6 = vmax.f32 %v3901_v2, 0.0  ;;  %v3903_v5 = vadd.f32 %v3902_v1, %v3862_v3 }
 0x2b6   : > { %v3864_v7 = vpop.f32.mrf.mxu0 }
 0x2b7   : > { %v3905_v8 = vpop.f32.mrf.mxu1  ;;  %v4173_v9 = vmax.f32 %v4172_v47, %v4159_v6  ;;  %v4160_v20 = vmax.f32 %v3903_v5, 0.0  ;;  %v6675_v47 = vld [vmem:[#allocation8 + $0x60] ss:$16 sps:$4 sm:$0xff]  }
 0x2b8   : > { %4404 = vmatpush1.bf16.msra.mxu0 %v6675_v47 }
 0x2b9   : > { %v7426_v10 = vmax.f32 %v4173_v9, %v4160_v20  ;;  %4405 = vmatprep.subr.bf16.mxu0 %v6683_v37 }
 0x2bc   : > { %4406 = vmatpush1.bf16.msra.mxu0 %v6681_v39 }
 0x2bd   : > { %4407 = vmatprep.subr.bf16.mxu0 %v6689_v41 }
 0x2c0   : > { %4408 = vmatpush1.bf16.msra.mxu0 %v6687_v43 }
 0x2c1   : > { %4409 = vmatprep.subr.bf16.mxu0 %v6695_v44 }
 0x2c4   : > { %4410 = vmatpush1.bf16.msra.mxu0 %v6693_v46  ;;  %v6702_v46 = vld [vmem:[#allocation11 + $0xb8] sm:$0xff]  }
 0x2c5   : > { %5734 = vmatprep.subr.bf16.mxu0 %v6699_v50  ;;  %v6707_v50 = vld [vmem:[#allocation11 + $0x68] sm:$0xff]  }
 0x2f0   : > { %v3941_v57 = vpop.f32.mrf.mxu0 }
 0x2f1   : > { %v3982_v58 = vpop.f32.mrf.mxu1  ;;  %v3942_v61 = vadd.f32 %v3941_v57, %v1019_v53  ;;  %v6709_v53 = vld [vmem:[#allocation11 + $0x28] sm:$0xff]   ;;  %v6711_v57 = vld [vmem:[#allocation11 + $0x60] sm:$0xff]  }
 0x2f2   : > { %v3943_v62 = vpop.f32.mrf.mxu0 }
 0x2f3   : > { %v3984_v63 = vpop.f32.mrf.mxu1  ;;  %v3983_v0 = vadd.f32 %v3982_v58, %v3942_v61  ;;  %v3944_v1 = vadd.f32 %v3943_v62, %v1023_v54  ;;  %v6710_v54 = vld [vmem:[#allocation11 + $0xa8] sm:$0xff]   ;;  %v6712_v58 = vld [vmem:[#allocation11 + $0xe0] sm:$0xff]  }
 0x2f4   : > { %v3945_v2 = vpop.f32.mrf.mxu0  ;;  %v6713_v61 = vld [vmem:[#allocation11 + $0x20] sm:$0xff]  }
 0x2f5   : > { %v3986_v3 = vpop.f32.mrf.mxu1  ;;  %v4161_v4 = vmax.f32 %v3983_v0, 0.0  ;;  %v3985_v28 = vadd.f32 %v3984_v63, %v3944_v1  ;;  %v6714_v62 = vld [vmem:[#allocation11 + $0xa0] sm:$0xff]   ;;  %v6715_v63 = vld [vmem:[#allocation11 + $0x58] sm:$0xff]  }
 0x2f6   : > { %v3946_v6 = vpop.f32.mrf.mxu0  ;;  %v6716_v0 = vld [vmem:[#allocation11 + $0xd8] sm:$0xff]   ;;  %v6719_v3 = vld [vmem:[#allocation11 + $0x50] sm:$0xff]  }
 0x2f7   : > { %v3987_v5 = vpop.f32.mrf.mxu1  ;;  %v4175_v7 = vmax.f32 %v7426_v10, %v4161_v4  ;;  %v4162_v8 = vmax.f32 %v3985_v28, 0.0  ;;  %v6717_v1 = vld [vmem:[#allocation11 + $0x18] sm:$0xff]   ;;  %v6720_v4 = vld [vmem:[#allocation11 + $0xd0] sm:$0xff]  }
 0x2f8   : > { %v6718_v2 = vld [vmem:[#allocation11 + $0x98] sm:$0xff]   ;;  %v6721_v28 = vld [vmem:[#allocation11 + $0x10] sm:$0xff]   ;;  %v6723_v5 = vld [vmem:[#allocation11 + $0x48] sm:$0xff]  }
 0x2f9   : > { %v4176_v9 = vmax.f32 %v4175_v7, %v4162_v8  ;;  %v6722_v6 = vld [vmem:[#allocation11 + $0x90] sm:$0xff]   ;;  %v6724_v7 = vld [vmem:[#allocation11 + $0xc8] sm:$0xff]  }
 0x2fa   : > { %v6725_v8 = vld [vmem:[#allocation11 + $0x8] sm:$0xff]  }
 0x330   : > { %v4023_v20 = vpop.f32.mrf.mxu0 }
 0x331   : > { %v4064_v11 = vpop.f32.mrf.mxu1  ;;  %v4024_v25 = vadd.f32 %v4023_v20, %v1027_v23  ;;  %v6727_v20 = vld [vmem:[#allocation11 + $0x40] sm:$0xff]  }
 0x332   : > { %v4025_v12 = vpop.f32.mrf.mxu0 }
 0x333   : > { %v4066_v13 = vpop.f32.mrf.mxu1  ;;  %v4065_v10 = vadd.f32 %v4064_v11, %v4024_v25  ;;  %v4026_v30 = vadd.f32 %v4025_v12, %v1031_v29  ;;  %v6728_v11 = vld [vmem:[#allocation11 + $0xc0] sm:$0xff]  }
 0x334   : > { %v4027_v14 = vpop.f32.mrf.mxu0  ;;  %v6729_v12 = vld [vmem:[#allocation11] sm:$0xff]  }
 0x335   : > { %v4068_v15 = vpop.f32.mrf.mxu1  ;;  %v4163_v33 = vmax.f32 %v4065_v10, 0.0  ;;  %v4067_v34 = vadd.f32 %v4066_v13, %v4026_v30  ;;  %v6730_v13 = vld [vmem:[#allocation11 + $0x80] sm:$0xff]   ;;  %v7074_v14 = vmov 0.0  }
 0x336   : > { %v4028_v17 = vpop.f32.mrf.mxu0  ;;  %v4213_v15 = vld [vmem:[#allocation10] sm:$0xf] }
 0x337   : > { %v4069_v27 = vpop.f32.mrf.mxu1  ;;  %v4177_v37 = vmax.f32 %v4176_v9, %v4163_v33  ;;  %v4164_v38 = vmax.f32 %v4067_v34, 0.0  ;;  %v6726_v9 = vld [vmem:[#allocation11 + $0x88] sm:$0xff]   ;;  %v4218_v17 = vrot.slane %v4213_v15, %v7358_v21  ;;  %v4222_v23 = vrot.slane %v4213_v15, %v7361_v24 }
 0x338   : > { %v4226_v27 = vrot.slane %v4213_v15, %v7374_v19  ;;  %v4230_v25 = vrot.slane %v4213_v15, %v7377_v22 }
 0x339   : > { %v4178_v43 = vmax.f32 %v4177_v37, %v4164_v38 }
 0x350   : > { %v5706_v31 = vpop.f32.mrf.mxu0 }
 0x351   : > { %v5728_v32 = vpop.f32.mrf.mxu1 }
 0x352   : > { %v5707_v55 = vpop.f32.mrf.mxu0 }
 0x353   : > { %v5729_v36 = vpop.f32.mrf.mxu1  ;;  %v5708_v47 = vadd.f32 %v5707_v55, %v5706_v31 }
 0x354   : > { %v5709_v51 = vpop.f32.mrf.mxu0  ;;  %v5730_v40 = vadd.f32 %v5729_v36, %v5728_v32 }
 0x355   : > { %v5731_v18 = vpop.f32.mrf.mxu1  ;;  %v4106_v39 = vadd.f32 %v5708_v47, %v1035_v35 }
 0x356   : > { %v5710_v26 = vpop.f32.mrf.mxu0 }
 0x357   : > { %v5732_v41 = vpop.f32.mrf.mxu1  ;;  %v4146_v42 = vadd.f32 %v5730_v40, %v4106_v39  ;;  %v6731_v39 = vld [vmem:[#allocation14 + $0x38] sm:$0xff]   ;;  %v6732_v26 = vld [vmem:[#allocation14 + $0x30] sm:$0xff]  }
 0x358   : > { %v6733_v41 = vld [vmem:[#allocation14 + $0x28] sm:$0xff]  }
 0x359   : > { %v4165_v60 = vmax.f32 %v4146_v42, 0.0  ;;  %v6734_v42 = vld [vmem:[#allocation14 + $0x20] sm:$0xff]  }
 0x35b   : > { %v4179_v44 = vmax.f32 %v4178_v43, %v4165_v60  ;;  %v6735_v43 = vld [vmem:[#allocation14 + $0x18] sm:$0xff]   ;;  %v6736_v60 = vld [vmem:[#allocation14 + $0x10] sm:$0xff]  }
 0x35d   : > { %v4180_v16 = vpack.c.bf16 %v4179_v44, %v4179_v44  ;;  %v6737_v44 = vld [vmem:[#allocation14 + $0x8] sm:$0xff]  }
 0x35f   : > { %4428 = vmatmul.mubr.bf16.vlgmr.msra.gmra.mxu0 %v4180_v16  ;;  %4469 = vmatmul.mubr.bf16.vlgmr.msra.gmra.mxu1 %v4180_v16 }
 0x360   : > { %5735 = vmatpush3.bf16.msra.mxu0 %v6701_v45  ;;  %5757 = vmatpush3.bf16.msra.mxu1 %v6702_v46  ;;  %v6738_v45 = vld [vmem:[#allocation14] sm:$0xff]  }
 0x361   : > { %5736 = vmatprep.subr.bf16.mxu0 %v6703_v48  ;;  %5758 = vmatprep.subr.bf16.mxu1 %v6704_v59  ;;  %v5643_v48 = vld [vmem:[#allocation13] ss:$0 sm:$0xff] }
 0x364   : > { %5737 = vmatpush3.bf16.msra.mxu0 %v6705_v56  ;;  %5759 = vmatpush3.bf16.msra.mxu1 %v6706_v49 }
 0x365   : > { %5738 = vmatprep.subr.bf16.mxu0 %v6707_v50  ;;  %5760 = vmatprep.subr.bf16.mxu1 %v6708_v52 }
 0x368   : > { %5739 = vmatpush3.bf16.msra.mxu0 %v6709_v53  ;;  %5761 = vmatpush3.bf16.msra.mxu1 %v6710_v54 }
 0x369   : > { %5740 = vmatprep.subr.bf16.mxu0 %v6711_v57  ;;  %5762 = vmatprep.subr.bf16.mxu1 %v6712_v58 }
 0x36c   : > { %5741 = vmatpush3.bf16.msra.mxu0 %v6713_v61  ;;  %5763 = vmatpush3.bf16.msra.mxu1 %v6714_v62 }
 0x36d   : > { %5742 = vmatprep.subr.bf16.mxu0 %v6715_v63  ;;  %5764 = vmatprep.subr.bf16.mxu1 %v6716_v0  ;;  %v5676_v0 = vld [vmem:[#allocation16] ss:$0 sm:$0xff] }
 0x370   : > { %5743 = vmatpush3.bf16.msra.mxu0 %v6717_v1  ;;  %5765 = vmatpush3.bf16.msra.mxu1 %v6718_v2 }
 0x371   : > { %5744 = vmatprep.subr.bf16.mxu0 %v6719_v3  ;;  %5766 = vmatprep.subr.bf16.mxu1 %v6720_v4 }
 0x374   : > { %5745 = vmatpush3.bf16.msra.mxu0 %v6721_v28  ;;  %5767 = vmatpush3.bf16.msra.mxu1 %v6722_v6 }
 0x375   : > { %5746 = vmatprep.subr.bf16.mxu0 %v6723_v5  ;;  %5768 = vmatprep.subr.bf16.mxu1 %v6724_v7 }
 0x378   : > { %5747 = vmatpush3.bf16.msra.mxu0 %v6725_v8  ;;  %5769 = vmatpush3.bf16.msra.mxu1 %v6726_v9 }
 0x379   : > { %5748 = vmatprep.subr.bf16.mxu0 %v6727_v20  ;;  %5770 = vmatprep.subr.bf16.mxu1 %v6728_v11 }
 0x37c   : > { %5749 = vmatpush3.bf16.msra.mxu0 %v6729_v12  ;;  %5771 = vmatpush3.bf16.msra.mxu1 %v6730_v13 }
 0x37d   : > { %5787 = vmatprep.subr.bf16.mxu0 %v7074_v14 }
 0x41f   : > { %v4429_v29 = vpop.f32.mrf.mxu0  ;;  %v4470_v10 = vpop.f32.mrf.mxu1 }
 0x420   : > { %v4430_v30 = vadd.f32 %v4429_v29, %v4218_v17  ;;  %v4471_v31 = vadd.f32 %v4470_v10, %v4226_v27 }
 0x421   : > { %v4431_v32 = vpop.f32.mrf.mxu0  ;;  %v4472_v33 = vpop.f32.mrf.mxu1 }
 0x422   : > { %v4432_v34 = vadd.f32 %v4431_v32, %v4222_v23  ;;  %v4473_v35 = vadd.f32 %v4472_v33, %v4230_v25  ;;  %v4477_v55 = vmax.f32 %v4430_v30, 0.0  ;;  %v4479_v36 = vmax.f32 %v4471_v31, 0.0 }
 0x423   : > { %v4433_v47 = vpop.f32.mrf.mxu0  ;;  %v4474_v51 = vpop.f32.mrf.mxu1 }
 0x424   : > { %v4478_v18 = vmax.f32 %v4432_v34, 0.0  ;;  %v4480_v21 = vmax.f32 %v4473_v35, 0.0  ;;  %v4481_v22 = vpack.c.bf16 %v4477_v55, %v4477_v55  ;;  %v4483_v40 = vpack.c.bf16 %v4479_v36, %v4479_v36 }
 0x425   : > { %v4434_v37 = vpop.f32.mrf.mxu0  ;;  %v4475_v19 = vpop.f32.mrf.mxu1 }
 0x426   : > { %v4482_v38 = vpack.c.bf16 %v4478_v18, %v4478_v18  ;;  %v4484_v24 = vpack.c.bf16 %v4480_v21, %v4480_v21 }
 0x428   : > { %4780 = vmatprep.mubr.bf16.mxu0 %v4482_v38  ;;  %4820 = vmatprep.mubr.bf16.mxu1 %v4484_v24 }
 0x429   : > { %4781 = vmatmul.mubr.bf16.vlgmr.msra.gmra.mxu0 %v4481_v22  ;;  %4821 = vmatmul.mubr.bf16.vlgmr.msra.gmra.mxu1 %v4483_v40 }
 0x42a   : > { %5788 = vmatpush3.bf16.msra.mxu0 %v6731_v39  ;;  %5803 = vmatprep.mubr.msk.bf16.mxu0 %vm7075_vm0, %v7074_v14 }
 0x42b   : > { %5789 = vmatprep.subr.bf16.mxu0 %v7074_v14 }
 0x42e   : > { %5790 = vmatpush3.bf16.msra.mxu0 %v6732_v26 }
 0x42f   : > { %5791 = vmatprep.subr.bf16.mxu0 %v7074_v14 }
 0x432   : > { %5792 = vmatpush3.bf16.msra.mxu0 %v6733_v41 }
 0x433   : > { %5793 = vmatprep.subr.bf16.mxu0 %v7074_v14 }
 0x436   : > { %5794 = vmatpush3.bf16.msra.mxu0 %v6734_v42 }
 0x437   : > { %5795 = vmatprep.subr.bf16.mxu0 %v7074_v14 }
 0x43a   : > { %5796 = vmatpush3.bf16.msra.mxu0 %v6735_v43 }
 0x43b   : > { %5797 = vmatprep.subr.bf16.mxu0 %v7074_v14 }
 0x43e   : > { %5798 = vmatpush3.bf16.msra.mxu0 %v6736_v60 }
 0x43f   : > { %5799 = vmatprep.subr.bf16.mxu0 %v7074_v14 }
 0x442   : > { %5800 = vmatpush3.bf16.msra.mxu0 %v6737_v44 }
 0x443   : > { %5801 = vmatprep.subr.bf16.mxu0 %v7074_v14 }
 0x446   : > { %5802 = vmatpush3.bf16.msra.mxu0 %v6738_v45 }
 0x4e9   : > { %v5750_v46 = vpop.f32.mrf.mxu0  ;;  %v5772_v16 = vpop.f32.mrf.mxu1 }
 0x4eb   : > { %v5751_v59 = vpop.f32.mrf.mxu0  ;;  %v5773_v56 = vpop.f32.mrf.mxu1 }
 0x4ec   : > { %v5752_v49 = vadd.f32 %v5751_v59, %v5750_v46  ;;  %v5774_v54 = vadd.f32 %v5773_v56, %v5772_v16 }
 0x4ed   : > { %v5753_v50 = vpop.f32.mrf.mxu0  ;;  %v5775_v52 = vpop.f32.mrf.mxu1 }
 0x4ee   : > { %v4783_v53 = vadd.f32 %v5752_v49, %v5643_v48 }
 0x4ef   : > { %v5754_v57 = vpop.f32.mrf.mxu0  ;;  %v5776_v58 = vpop.f32.mrf.mxu1 }
 0x4f0   : > { %v4823_v61 = vadd.f32 %v5774_v54, %v4783_v53 }
 0x4f2   : > { %v4828_v62 = vmax.f32 %v4823_v61, 0.0 }
 0x4f4   : > { %v4829_v63 = vpack.c.bf16 %v4828_v62, %v4828_v62 }
 0x4f6   : > { %5804 = vmatmul.mubr.bf16.vlgmr.msra.gmra.mxu0 %v4829_v63 }
 0x5b6   : > { %v4935_v1 = vpop.f32.mrf.mxu0 }
 0x5b7   : > { %v4936_v2 = vadd.f32 %v5676_v0, %v4935_v1 }
 0x5b8   : > { %v5805_v3 = vpop.f32.mrf.mxu0 }
 0x5b9   : > { %4941 = vst [vmem:[%s456_s16] sm:$0xff] %v4936_v2 }
 0x5ba   : > { %v4938_v4 = vpop.f32.mrf.mxu0 }
 0x5bb   : > { %6989 = shalt.err (!%p6986_p6)
}
 0x5bc   : > { %s6990_s21 = scalar_lea.hbm %s7451_s13, 128  ;;  %s6994_s24 = scalar_lea.hbm %s7503_s9, 256 }
 0x5bd   : > { %p6991_p10 = scmp.ne.s32.totalorder %s7451_s13, %s6990_s21  ;;  %p6995_p5 = scmp.lt.s32.totalorder %s7451_s13, %s7503_s9 }
 0x5be   : > { %p6996_p8 = scmp.lt.s32.totalorder %s6994_s24, %s6990_s21 }
 0x5bf   : > { %p6992_p12 = pnand %p6991_p10, %p7535_p9 }
 0x5c0   : > { %p6997_p1 = por %p6996_p8, %p6995_p5 }
 0x5c1   : > { %p6993_p0 = pneg %p6992_p12 }
 0x5c3   : > { %p6998_p4 = pnand %p6997_p1, %p6993_p0 }
 0x5c5   : > { %7001 = shalt.err (!%p6998_p4)
}
 0x5c6   : > { %5841 = dma.vmem_to_hbm [thread:$0]  (%p7535_p9), %s7453_s14, 128, %s7451_s13, %s4943_s18   ;;  %v5806_v28 = vpop.f32.mrf.mxu0 }
 0x5c7 PF: > { %s4968_s4 = sand.u32 1, %s7044_s30   ;;  %p7536_p7 = scmp.ne.s32.totalorder %s7523_s25, 0 }
 0x5c8   : > { %p7537_p13 = scmp.ge.s32.totalorder %s7056_s12, 2  ;;  %s4969_s16 = scalar_lea.sflag [#allocation4], %s4968_s4 }
 0x5ca   : > { %p5873_p2 = pnand %p7537_p13, %p7536_p7 }
 0x5cc   : > { %p5874_p11 = pneg %p5873_p2 }
 0x5ce   : > { %7039 = dma.done.wait (%p5874_p11), %s4969_s16, 128  }
 0x5cf   : > { %7041 = vsyncadd (%p5874_p11), %s4969_s16, 4294967168  ;;  %p26_p3 = scmp.ge.s32.totalorder %s7240_s19, 4   ;;  %s7538_s30 = smov %s7048_s10 }
 0x5d0   : > { %s7539_s10 = smov %s7052_s11  ;;  %s7540_s11 = smov %s7251_s17 }
 0x5d1   : > { %s7541_s12 = smov %s7240_s19  ;;  %28 = sbr.rel (!%p26_p3) target bundleno = 14 (0xe), region = 133 }
 0x5d6   :  { %4974 = vsyncpa [#allocation3], 1 }
 0x5d7   :  { %4976 = vsyncpa [#allocation3 + $0x1], 1 }
 0x5d8   :  { %4977 = vsyncpa [#allocation6], 1 }
 0x5d9   :  { %4978 = vsyncpa [#allocation9], 1 }
 0x5da   :  { %4979 = vsyncpa [#allocation12], 1 }
 0x5db   :  { %4980 = vsyncpa [#allocation15], 1 }
 0x5dc   :  { %4981 = vsyncpa [#allocation4], 1 }
 0x5dd   :  { %4983 = vsyncpa [#allocation4 + $0x1], 1 }

</bundles_post_ra>
